<compile_context>
chip_gen: v5e
topology: v5e:2x2
jax: 0.10.0
libtpu: 0.0.40
codegen_flags: <defaults>
</compile_context>

<pallas_src>
import functools

import jax
import jax.numpy as jnp
from jax import lax
from jax.experimental import pallas as pl
from jax.experimental.pallas import tpu as pltpu

LANE = 128      # lane width of a vreg
UNROLL = 8      # sublane depth / per-group unroll factor


def _round_up(n, m):
    return ((n + m - 1) // m) * m


def _rnn_chunk_kernel(x_ref, wih_t_hbm_ref, whh_t_hbm_ref, res_ref,
                      wih_t_ref, whh_t_ref, h_state_ref, copy_sem,
                      *, unroll, slab_store, hoist_whh):
    """Process one chunk of Tc timesteps.

    x_ref:         (Tc, Ip)  input chunk (lane-padded features, auto-pipelined)
    wih_t_hbm_ref: (Ip, Hp)  W_ih^T in HBM (memory_space=ANY)
    whh_t_hbm_ref: (Hp, Hp)  W_hh^T in HBM (memory_space=ANY)
    res_ref:       (Tc, Hp)  output chunk of hidden states
    wih_t_ref:     (Ip, Hp)  VMEM scratch: single-buffered W_ih^T
    whh_t_ref:     (Hp, Hp)  VMEM scratch: single-buffered W_hh^T
    h_state_ref:   (1, Hp)   VMEM scratch persisting across chunks: carried h
    copy_sem:      (2,)      DMA semaphores for the one-time weight copies
    """
    # One-time setup on the first grid step: copy the weights into VMEM
    # (single buffer, persists across grid steps) and zero the hidden state.
    @pl.when(pl.program_id(0) == 0)
    def _init():
        cp_ih = pltpu.make_async_copy(wih_t_hbm_ref, wih_t_ref, copy_sem.at[0])
        cp_hh = pltpu.make_async_copy(whh_t_hbm_ref, whh_t_ref, copy_sem.at[1])
        cp_ih.start()
        cp_hh.start()
        h_state_ref[...] = jnp.zeros_like(h_state_ref)
        cp_ih.wait()
        cp_hh.wait()

    tc = res_ref.shape[0]
    n_groups = tc // unroll

    # Hidden state lives in vregs as the fori_loop carry; the VMEM scratch is
    # touched exactly twice per chunk (read here, write after the loop).
    h0 = h_state_ref[...]                         # (1, Hp)

    # Only keep W_hh^T resident in vregs when it is small; otherwise index the
    # ref inside the dot so Mosaic streams it from VMEM (avoids spills).
    whh_t_res = whh_t_ref[...] if hoist_whh else None

    def group_body(g, h):
        base = pl.multiple_of(g * unroll, unroll)
        # Per-group input projection: one (UNROLL,Ip)@(Ip,Hp) MXU matmul that
        # hides under the serial recurrence (MXU is otherwise idle).
        xw_blk = jnp.dot(x_ref[pl.ds(base, unroll), :], wih_t_ref[...],
                         precision=lax.Precision.HIGHEST,
                         preferred_element_type=jnp.float32)   # (UNROLL, Hp)
        rows = []
        for j in range(unroll):                   # static unroll: LLO visibility
            whh_t = whh_t_res if hoist_whh else whh_t_ref[...]
            hh = jnp.dot(h, whh_t,
                         precision=lax.Precision.HIGHEST,
                         preferred_element_type=jnp.float32)   # (1, Hp)
            h = jnp.tanh(xw_blk[j:j + 1, :] + hh)
            if slab_store:
                rows.append(h)
            else:
                # Large Hp: store each row immediately (vst slot has slack)
                # instead of keeping UNROLL*(Hp/128) vregs live.
                res_ref[pl.ds(base + j, 1), :] = h
        if slab_store:
            # Small Hp: one unmasked, sublane-aligned (UNROLL, Hp) slab store.
            res_ref[pl.ds(base, unroll), :] = jnp.concatenate(rows, axis=0)
        return h

    h_final = lax.fori_loop(0, n_groups, group_body, h0)
    h_state_ref[...] = h_final


@functools.partial(jax.jit, static_argnames=("chunk_size",))
def my_diy_rnn(x, ih_weight, hh_weight, chunk_size=None):
    """x: (S, I); ih_weight: (H, I); hh_weight: (H, H).
    Returns (res: (S, H), h_T: (H,)) in float32."""
    x = jnp.asarray(x, jnp.float32)
    ih_weight = jnp.asarray(ih_weight, jnp.float32)
    hh_weight = jnp.asarray(hh_weight, jnp.float32)

    S, I = x.shape
    H = ih_weight.shape[0]

    Ip = _round_up(I, LANE)
    Hp = _round_up(H, LANE)

    if chunk_size is None:
        # 512 amortizes the ~0.35us per-grid-step overhead on v5e/v6e; VMEM
        # use is bounded explicitly below.
        tc = min(512, _round_up(S, UNROLL))
    else:
        tc = int(chunk_size)
    assert tc % UNROLL == 0, "chunk_size must be a multiple of 8"
    s_pad = _round_up(S, tc)

    # Zero padding is mathematically inert: padded input feature columns meet
    # zero weight columns, padded hidden lanes stay exactly 0 (their weight
    # columns are zero, tanh(0)=0), and padded timesteps are sliced off.
    x_p = jnp.zeros((s_pad, Ip), jnp.float32).at[:S, :I].set(x)
    wih_t_p = jnp.zeros((Ip, Hp), jnp.float32).at[:I, :H].set(ih_weight.T)
    whh_t_p = jnp.zeros((Hp, Hp), jnp.float32).at[:H, :H].set(hh_weight.T)

    # vreg-pressure / layout policy (static).
    slab_store = (UNROLL * (Hp // LANE)) <= 16    # buffered rows <= 16 vregs
    hoist_whh = Hp <= 256                         # W_hh^T <= 32 vregs

    kernel = functools.partial(_rnn_chunk_kernel, unroll=UNROLL,
                               slab_store=slab_store, hoist_whh=hoist_whh)

    # Explicit VMEM budget: double-buffered x/res blocks + single-buffered
    # weights + hidden-state carry, with 2x headroom, clamped to [32, 64] MiB
    # (safe on v5e/v6e/v7x physical VMEM).
    est_bytes = 4 * (2 * tc * Ip + 2 * tc * Hp + Ip * Hp + Hp * Hp + Hp)
    vmem_limit = int(min(max(2 * est_bytes, 32 * 2**20), 64 * 2**20))

    grid = (s_pad // tc,)

    res_p = pl.pallas_call(
        kernel,
        out_shape=jax.ShapeDtypeStruct((s_pad, Hp), jnp.float32),
        grid=grid,
        in_specs=[
            pl.BlockSpec((tc, Ip), lambda i: (i, 0)),     # x: auto-pipelined
            pl.BlockSpec(memory_space=pl.ANY),            # W_ih^T: one manual copy
            pl.BlockSpec(memory_space=pl.ANY),            # W_hh^T: one manual copy
        ],
        out_specs=pl.BlockSpec((tc, Hp), lambda i: (i, 0)),
        scratch_shapes=[
            pltpu.VMEM((Ip, Hp), jnp.float32),   # single-buffered W_ih^T
            pltpu.VMEM((Hp, Hp), jnp.float32),   # single-buffered W_hh^T
            pltpu.VMEM((1, Hp), jnp.float32),    # hidden state carried across chunks
            pltpu.SemaphoreType.DMA((2,)),       # weight-copy semaphores
        ],
        compiler_params=pltpu.CompilerParams(
            dimension_semantics=("arbitrary",),
            vmem_limit_bytes=vmem_limit),
    )(x_p, wih_t_p, whh_t_p)

    res = res_p[:S, :H]
    ht = res[S - 1]
    return res, ht


def reference_rnn(x, ih_weight, hh_weight):
    """Pure-JAX reference mirroring the numpy loop in MyDiyRnn.forward."""
    H = ih_weight.shape[0]
    h = jnp.zeros((H,), jnp.float32)
    outs = []
    for t in range(x.shape[0]):
        h = jnp.tanh(ih_weight @ x[t] + hh_weight @ h)
        outs.append(h)
    return jnp.stack(outs), h


if __name__ == "__main__":
    # Shapes implied by the module: input_size=3, hidden_size=4; seq=8.
    seq_len, input_size, hidden_size = 8, 3, 4

    key = jax.random.PRNGKey(0)
    kx, kih, khh = jax.random.split(key, 3)

    # PyTorch nn.RNN-style uniform(-1/sqrt(H), 1/sqrt(H)) init.
    bound = 1.0 / (hidden_size ** 0.5)
    ih_weight = jax.random.uniform(
        kih, (hidden_size, input_size), jnp.float32, -bound, bound)
    hh_weight = jax.random.uniform(
        khh, (hidden_size, hidden_size), jnp.float32, -bound, bound)

    x = jax.random.normal(kx, (seq_len, input_size), jnp.float32)

    res, ht = my_diy_rnn(x, ih_weight, hh_weight)
    jax.block_until_ready((res, ht))

    res_ref, ht_ref = reference_rnn(x, ih_weight, hh_weight)
    assert res.shape == (seq_len, hidden_size)
    assert ht.shape == (hidden_size,)
    assert jnp.allclose(res, res_ref, atol=1e-5, rtol=1e-5)
    assert jnp.allclose(ht, ht_ref, atol=1e-5, rtol=1e-5)

    # Second check: sequence length not a multiple of the chunk, multi-chunk
    # grid (exercises the cross-chunk hidden-state carry, seq padding, and the
    # one-time weight copy persisting across grid steps).
    x2 = jax.random.normal(jax.random.PRNGKey(1), (37, input_size), jnp.float32)
    res2, ht2 = my_diy_rnn(x2, ih_weight, hh_weight, chunk_size=16)
    jax.block_until_ready((res2, ht2))
    res2_ref, ht2_ref = reference_rnn(x2, ih_weight, hh_weight)
    assert jnp.allclose(res2, res2_ref, atol=1e-5, rtol=1e-5)
    assert jnp.allclose(ht2, ht2_ref, atol=1e-5, rtol=1e-5)

    print("KERNEL_OK")
</pallas_src>

<mosaic_0001>
module attributes {stable_mosaic.version = 11 : i64} {
  func.func @_rnn_chunk_kernel(%arg0: i32, %arg1: memref<8x128xf32, #tpu.memory_space<vmem>>, %arg2: memref<128x128xf32, #tpu.memory_space<any>>, %arg3: memref<128x128xf32, #tpu.memory_space<any>>, %arg4: memref<8x128xf32, #tpu.memory_space<vmem>>, %arg5: memref<128x128xf32, #tpu.memory_space<vmem>>, %arg6: memref<128x128xf32, #tpu.memory_space<vmem>>, %arg7: memref<1x128xf32, #tpu.memory_space<vmem>>, %arg8: memref<2x!tpu.dma_semaphore, #tpu.memory_space<semaphore_mem>>) attributes {dimension_semantics = [#tpu.dimension_semantics<arbitrary>], iteration_bounds = array<i64: 1>, scalar_prefetch = 0 : i64, scratch_operands = 4 : i64, tpu.core_type = #tpu.core_type<tc>, window_params = [{transform_indices = @transform_0, window_bounds = array<i64: 8, 128>}, {}, {}, {transform_indices = @transform_3, window_bounds = array<i64: 8, 128>}]} {
    %c0_i32 = arith.constant 0 : i32
    %0 = arith.cmpi eq, %arg0, %c0_i32 : i32
    %1 = arith.extui %0 : i1 to i32
    %c0_i32_0 = arith.constant 0 : i32
    %2 = arith.cmpi ne, %1, %c0_i32_0 : i32
    scf.if %2 {
      %c0_i32_19 = arith.constant 0 : i32
      %47 = tpu.memref_slice %arg8[%c0_i32_19] : memref<2x!tpu.dma_semaphore, #tpu.memory_space<semaphore_mem>> -> memref<1x!tpu.dma_semaphore, #tpu.memory_space<semaphore_mem>>
      %48 = tpu.memref_squeeze %47 : memref<1x!tpu.dma_semaphore, #tpu.memory_space<semaphore_mem>> -> memref<!tpu.dma_semaphore, #tpu.memory_space<semaphore_mem>>
      tpu.enqueue_dma source(%arg2 : memref<128x128xf32, #tpu.memory_space<any>>) target(%arg5 : memref<128x128xf32, #tpu.memory_space<vmem>>) target_semaphore(%48 : memref<!tpu.dma_semaphore, #tpu.memory_space<semaphore_mem>>)
      %c1_i32_20 = arith.constant 1 : i32
      %49 = tpu.memref_slice %arg8[%c1_i32_20] : memref<2x!tpu.dma_semaphore, #tpu.memory_space<semaphore_mem>> -> memref<1x!tpu.dma_semaphore, #tpu.memory_space<semaphore_mem>>
      %50 = tpu.memref_squeeze %49 : memref<1x!tpu.dma_semaphore, #tpu.memory_space<semaphore_mem>> -> memref<!tpu.dma_semaphore, #tpu.memory_space<semaphore_mem>>
      tpu.enqueue_dma source(%arg3 : memref<128x128xf32, #tpu.memory_space<any>>) target(%arg6 : memref<128x128xf32, #tpu.memory_space<vmem>>) target_semaphore(%50 : memref<!tpu.dma_semaphore, #tpu.memory_space<semaphore_mem>>)
      %cst_21 = arith.constant 0.000000e+00 : f32
      %51 = vector.broadcast %cst_21 : f32 to vector<1x128xf32>
      %c0_22 = arith.constant 0 : index
      %c0_23 = arith.constant 0 : index
      %52 = vector.load %arg7[%c0_22, %c0_23] : memref<1x128xf32, #tpu.memory_space<vmem>>, vector<1x128xf32>
      tpu.vector_store %arg7[%c0_22, %c0_23], %51 {strides = array<i32>} : memref<1x128xf32, #tpu.memory_space<vmem>>, vector<1x128xf32>,
      %c0_i32_24 = arith.constant 0 : i32
      %53 = tpu.memref_slice %arg8[%c0_i32_24] : memref<2x!tpu.dma_semaphore, #tpu.memory_space<semaphore_mem>> -> memref<1x!tpu.dma_semaphore, #tpu.memory_space<semaphore_mem>>
      %54 = tpu.memref_squeeze %53 : memref<1x!tpu.dma_semaphore, #tpu.memory_space<semaphore_mem>> -> memref<!tpu.dma_semaphore, #tpu.memory_space<semaphore_mem>>
      tpu.wait_dma2 semaphore(%54 : memref<!tpu.dma_semaphore, #tpu.memory_space<semaphore_mem>>) src(%arg2 : memref<128x128xf32, #tpu.memory_space<any>>) dst(%arg5 : memref<128x128xf32, #tpu.memory_space<vmem>>)
      %c1_i32_25 = arith.constant 1 : i32
      %55 = tpu.memref_slice %arg8[%c1_i32_25] : memref<2x!tpu.dma_semaphore, #tpu.memory_space<semaphore_mem>> -> memref<1x!tpu.dma_semaphore, #tpu.memory_space<semaphore_mem>>
      %56 = tpu.memref_squeeze %55 : memref<1x!tpu.dma_semaphore, #tpu.memory_space<semaphore_mem>> -> memref<!tpu.dma_semaphore, #tpu.memory_space<semaphore_mem>>
      tpu.wait_dma2 semaphore(%56 : memref<!tpu.dma_semaphore, #tpu.memory_space<semaphore_mem>>) src(%arg3 : memref<128x128xf32, #tpu.memory_space<any>>) dst(%arg6 : memref<128x128xf32, #tpu.memory_space<vmem>>)
    } else {
    }
    %c0 = arith.constant 0 : index
    %c0_1 = arith.constant 0 : index
    %3 = vector.load %arg7[%c0, %c0_1] : memref<1x128xf32, #tpu.memory_space<vmem>>, vector<1x128xf32>
    %c0_2 = arith.constant 0 : index
    %c0_3 = arith.constant 0 : index
    %4 = vector.load %arg6[%c0_2, %c0_3] : memref<128x128xf32, #tpu.memory_space<vmem>>, vector<128x128xf32>
    %c0_i32_4 = arith.constant 0 : i32
    %c8_i32 = arith.constant 8 : i32
    %5 = arith.muli %c0_i32_4, %c8_i32 : i32
    %6 = tpu.assume_multiple %5, 8 : i32
    %7 = arith.index_cast %6 : i32 to index
    %c0_5 = arith.constant 0 : index
    %8 = vector.load %arg1[%7, %c0_5] : memref<8x128xf32, #tpu.memory_space<vmem>>, vector<8x128xf32>
    %c0_6 = arith.constant 0 : index
    %c0_7 = arith.constant 0 : index
    %9 = vector.load %arg5[%c0_6, %c0_7] : memref<128x128xf32, #tpu.memory_space<vmem>>, vector<128x128xf32>
    %cst = arith.constant dense<0.000000e+00> : vector<8x128xf32>
    %10 = tpu.matmul %8, %9, %cst {dimension_numbers = #tpu.dot_dimension_numbers<[1], [0], [0], [1], [0, 0, 1, 1], [], []>, precision = #tpu.contract_precision<fp32>} : vector<8x128xf32>, vector<128x128xf32>, vector<8x128xf32> -> vector<8x128xf32>
    %cst_8 = arith.constant dense<0.000000e+00> : vector<1x128xf32>
    %11 = tpu.matmul %3, %4, %cst_8 {dimension_numbers = #tpu.dot_dimension_numbers<[1], [0], [0], [1], [0, 0, 1, 1], [], []>, precision = #tpu.contract_precision<fp32>} : vector<1x128xf32>, vector<128x128xf32>, vector<1x128xf32> -> vector<1x128xf32>
    %12 = vector.extract_strided_slice %10 {offsets = [0, 0], sizes = [1, 128], strides = [1, 1]} : vector<8x128xf32> to vector<1x128xf32>
    %13 = arith.addf %12, %11 : vector<1x128xf32>
    %14 = math.tanh %13 : vector<1x128xf32>
    %cst_9 = arith.constant dense<0.000000e+00> : vector<1x128xf32>
    %15 = tpu.matmul %14, %4, %cst_9 {dimension_numbers = #tpu.dot_dimension_numbers<[1], [0], [0], [1], [0, 0, 1, 1], [], []>, precision = #tpu.contract_precision<fp32>} : vector<1x128xf32>, vector<128x128xf32>, vector<1x128xf32> -> vector<1x128xf32>
    %16 = vector.extract_strided_slice %10 {offsets = [1, 0], sizes = [1, 128], strides = [1, 1]} : vector<8x128xf32> to vector<1x128xf32>
    %17 = arith.addf %16, %15 : vector<1x128xf32>
    %18 = math.tanh %17 : vector<1x128xf32>
    %cst_10 = arith.constant dense<0.000000e+00> : vector<1x128xf32>
    %19 = tpu.matmul %18, %4, %cst_10 {dimension_numbers = #tpu.dot_dimension_numbers<[1], [0], [0], [1], [0, 0, 1, 1], [], []>, precision = #tpu.contract_precision<fp32>} : vector<1x128xf32>, vector<128x128xf32>, vector<1x128xf32> -> vector<1x128xf32>
    %20 = vector.extract_strided_slice %10 {offsets = [2, 0], sizes = [1, 128], strides = [1, 1]} : vector<8x128xf32> to vector<1x128xf32>
    %21 = arith.addf %20, %19 : vector<1x128xf32>
    %22 = math.tanh %21 : vector<1x128xf32>
    %cst_11 = arith.constant dense<0.000000e+00> : vector<1x128xf32>
    %23 = tpu.matmul %22, %4, %cst_11 {dimension_numbers = #tpu.dot_dimension_numbers<[1], [0], [0], [1], [0, 0, 1, 1], [], []>, precision = #tpu.contract_precision<fp32>} : vector<1x128xf32>, vector<128x128xf32>, vector<1x128xf32> -> vector<1x128xf32>
    %24 = vector.extract_strided_slice %10 {offsets = [3, 0], sizes = [1, 128], strides = [1, 1]} : vector<8x128xf32> to vector<1x128xf32>
    %25 = arith.addf %24, %23 : vector<1x128xf32>
    %26 = math.tanh %25 : vector<1x128xf32>
    %cst_12 = arith.constant dense<0.000000e+00> : vector<1x128xf32>
    %27 = tpu.matmul %26, %4, %cst_12 {dimension_numbers = #tpu.dot_dimension_numbers<[1], [0], [0], [1], [0, 0, 1, 1], [], []>, precision = #tpu.contract_precision<fp32>} : vector<1x128xf32>, vector<128x128xf32>, vector<1x128xf32> -> vector<1x128xf32>
    %28 = vector.extract_strided_slice %10 {offsets = [4, 0], sizes = [1, 128], strides = [1, 1]} : vector<8x128xf32> to vector<1x128xf32>
    %29 = arith.addf %28, %27 : vector<1x128xf32>
    %30 = math.tanh %29 : vector<1x128xf32>
    %cst_13 = arith.constant dense<0.000000e+00> : vector<1x128xf32>
    %31 = tpu.matmul %30, %4, %cst_13 {dimension_numbers = #tpu.dot_dimension_numbers<[1], [0], [0], [1], [0, 0, 1, 1], [], []>, precision = #tpu.contract_precision<fp32>} : vector<1x128xf32>, vector<128x128xf32>, vector<1x128xf32> -> vector<1x128xf32>
    %32 = vector.extract_strided_slice %10 {offsets = [5, 0], sizes = [1, 128], strides = [1, 1]} : vector<8x128xf32> to vector<1x128xf32>
    %33 = arith.addf %32, %31 : vector<1x128xf32>
    %34 = math.tanh %33 : vector<1x128xf32>
    %cst_14 = arith.constant dense<0.000000e+00> : vector<1x128xf32>
    %35 = tpu.matmul %34, %4, %cst_14 {dimension_numbers = #tpu.dot_dimension_numbers<[1], [0], [0], [1], [0, 0, 1, 1], [], []>, precision = #tpu.contract_precision<fp32>} : vector<1x128xf32>, vector<128x128xf32>, vector<1x128xf32> -> vector<1x128xf32>
    %36 = vector.extract_strided_slice %10 {offsets = [6, 0], sizes = [1, 128], strides = [1, 1]} : vector<8x128xf32> to vector<1x128xf32>
    %37 = arith.addf %36, %35 : vector<1x128xf32>
    %38 = math.tanh %37 : vector<1x128xf32>
    %cst_15 = arith.constant dense<0.000000e+00> : vector<1x128xf32>
    %39 = tpu.matmul %38, %4, %cst_15 {dimension_numbers = #tpu.dot_dimension_numbers<[1], [0], [0], [1], [0, 0, 1, 1], [], []>, precision = #tpu.contract_precision<fp32>} : vector<1x128xf32>, vector<128x128xf32>, vector<1x128xf32> -> vector<1x128xf32>
    %40 = vector.extract_strided_slice %10 {offsets = [7, 0], sizes = [1, 128], strides = [1, 1]} : vector<8x128xf32> to vector<1x128xf32>
    %41 = arith.addf %40, %39 : vector<1x128xf32>
    %42 = math.tanh %41 : vector<1x128xf32>
    %43 = tpu.concatenate %14, %18, %22, %26, %30, %34, %38, %42 in 0 : vector<1x128xf32>, vector<1x128xf32>, vector<1x128xf32>, vector<1x128xf32>, vector<1x128xf32>, vector<1x128xf32>, vector<1x128xf32>, vector<1x128xf32> -> vector<8x128xf32>
    %44 = arith.index_cast %6 : i32 to index
    %c0_16 = arith.constant 0 : index
    %45 = vector.load %arg4[%44, %c0_16] : memref<8x128xf32, #tpu.memory_space<vmem>>, vector<8x128xf32>
    tpu.vector_store %arg4[%44, %c0_16], %43 {strides = array<i32>} : memref<8x128xf32, #tpu.memory_space<vmem>>, vector<8x128xf32>,
    %c1_i32 = arith.constant 1 : i32
    %c0_17 = arith.constant 0 : index
    %c0_18 = arith.constant 0 : index
    %46 = vector.load %arg7[%c0_17, %c0_18] : memref<1x128xf32, #tpu.memory_space<vmem>>, vector<1x128xf32>
    tpu.vector_store %arg7[%c0_17, %c0_18], %42 {strides = array<i32>} : memref<1x128xf32, #tpu.memory_space<vmem>>, vector<1x128xf32>,
    return
  }
  func.func @transform_0(%arg0: i32) -> (i32, i32) {
    %c0_i32 = arith.constant 0 : i32
    %c0_i32_0 = arith.constant 0 : i32
    return %arg0, %c0_i32 : i32, i32
  }
  func.func @transform_3(%arg0: i32) -> (i32, i32) {
    %c0_i32 = arith.constant 0 : i32
    %c0_i32_0 = arith.constant 0 : i32
    return %arg0, %c0_i32 : i32, i32
  }
}

</mosaic_0001>

<bundles_post_ra>
// kernel: my_diy_rnn.1
= control target key start
LH: loop header
LB: loop body
LE: loop exit
PB: predicated region body
PF: predicated region fallthrough
CT: control target
= control target key end

     0   :  { %s4805_s0 = inlined_call_operand.vmem [shape: f32[8,128], index: 0, kind: input, shape index: {}]   ;;  %s4806_s1 = inlined_call_operand.vmem [shape: f32[128,128], index: 1, kind: input, shape index: {}]   ;;  %s4807_s2 = inlined_call_operand.vmem [shape: f32[128,128], index: 2, kind: input, shape index: {}]   ;;  %s4808_s3 = inlined_call_operand.vmem [shape: f32[8,128], index: 3, kind: output, shape index: {}]  }
   0x1   :  { %v3363_v0 = vld [vmem:[%s4806_s1] sm:$0xff]  ;;  %v3368_v1 = vld [vmem:[%s4806_s1 + $0x8] sm:$0xff]  ;;  %v3373_v2 = vld [vmem:[%s4806_s1 + $0x10] sm:$0xff] }
   0x2   :  { %v3378_v3 = vld [vmem:[%s4806_s1 + $0x18] sm:$0xff]  ;;  %v3383_v4 = vld [vmem:[%s4806_s1 + $0x20] sm:$0xff]  ;;  %v3388_v5 = vld [vmem:[%s4806_s1 + $0x28] sm:$0xff] }
   0x3   :  { %v3393_v6 = vld [vmem:[%s4806_s1 + $0x30] sm:$0xff]  ;;  %v3398_v7 = vld [vmem:[%s4806_s1 + $0x38] sm:$0xff]  ;;  %v3403_v8 = vld [vmem:[%s4806_s1 + $0x40] sm:$0xff] }
   0x4   :  { %v42_v9 = vld [vmem:[%s4806_s1 + $0x48] sm:$0xff]  ;;  %v44_v10 = vld [vmem:[%s4806_s1 + $0x50] sm:$0xff]  ;;  %v46_v11 = vld [vmem:[%s4806_s1 + $0x58] sm:$0xff] }
   0x5   :  { %v48_v12 = vld [vmem:[%s4806_s1 + $0x60] sm:$0xff]  ;;  %v50_v13 = vld [vmem:[%s4806_s1 + $0x68] sm:$0xff]  ;;  %v52_v14 = vld [vmem:[%s4806_s1 + $0x70] sm:$0xff] }
   0x6   :  { %v54_v15 = vld [vmem:[%s4806_s1 + $0x78] sm:$0xff] }
   0x7   :  { %61 = vsyncadd [#allocation5], 2048  ;;  %v3429_v16 = vld [vmem:[%s4807_s2] sm:$0xff]  ;;  %v3434_v17 = vld [vmem:[%s4807_s2 + $0x8] sm:$0xff] }
   0x8   :  { %v3439_v18 = vld [vmem:[%s4807_s2 + $0x10] sm:$0xff]  ;;  %v3444_v19 = vld [vmem:[%s4807_s2 + $0x18] sm:$0xff]  ;;  %v3449_v20 = vld [vmem:[%s4807_s2 + $0x20] sm:$0xff] }
   0x9   :  { %v3454_v21 = vld [vmem:[%s4807_s2 + $0x28] sm:$0xff]  ;;  %v3459_v22 = vld [vmem:[%s4807_s2 + $0x30] sm:$0xff]  ;;  %v3464_v23 = vld [vmem:[%s4807_s2 + $0x38] sm:$0xff] }
   0xa   :  { %v3469_v24 = vld [vmem:[%s4807_s2 + $0x40] sm:$0xff]  ;;  %v3474_v25 = vld [vmem:[%s4807_s2 + $0x48] sm:$0xff]  ;;  %v3479_v26 = vld [vmem:[%s4807_s2 + $0x50] sm:$0xff] }
   0xb   :  { %v3484_v27 = vld [vmem:[%s4807_s2 + $0x58] sm:$0xff]  ;;  %v3489_v28 = vld [vmem:[%s4807_s2 + $0x60] sm:$0xff]  ;;  %v3494_v29 = vld [vmem:[%s4807_s2 + $0x68] sm:$0xff] }
   0xc   :  { %v3499_v30 = vld [vmem:[%s4807_s2 + $0x70] sm:$0xff]  ;;  %v3504_v31 = vld [vmem:[%s4807_s2 + $0x78] sm:$0xff] }
   0xd   :  { %110 = vsyncadd [#allocation5 + $0x1], 2048  ;;  %v3339_v32 = vmov 0.0  }
   0xe   :  { %111 = vst [vmem:[#allocation4] sm:$0x1] %v3339_v32 }
   0xf   :  { %3335 = dma.done.wait [#allocation5], 2048 }
  0x10   :  { %3336 = vsyncadd [#allocation5], 4294965248  ;;  %v3506_v33 = vand.u32 4294901760, %v54_v15  ;;  %v3508_v34 = vand.u32 4294901760, %v52_v14  ;;  %v3510_v35 = vand.u32 4294901760, %v50_v13  ;;  %v3512_v36 = vand.u32 4294901760, %v48_v12 }
  0x11   :  { %3337 = dma.done.wait [#allocation5 + $0x1], 2048 }
  0x12   :  { %3338 = vsyncadd [#allocation5 + $0x1], 4294965248  ;;  %v3514_v37 = vand.u32 4294901760, %v46_v11  ;;  %v3516_v38 = vand.u32 4294901760, %v44_v10  ;;  %v3518_v39 = vand.u32 4294901760, %v42_v9  ;;  %152 = vmatpush.msra.mxu0 %v3506_v33  ;;  %v3522_v40 = vsub.f32 %v54_v15, %v3506_v33  ;;  %348 = vmatpush.msra.mxu3 %v3506_v33 }
  0x13   :  { %v3525_v41 = vsub.f32 %v52_v14, %v3508_v34  ;;  %v3529_v42 = vsub.f32 %v50_v13, %v3510_v35  ;;  %v3532_v43 = vsub.f32 %v48_v12, %v3512_v36  ;;  %v3538_v45 = vand.u32 4294901760, %v3403_v8 }
  0x14   :  { %v3535_v44 = vsub.f32 %v46_v11, %v3514_v37  ;;  %295 = vmatpush.msra.mxu2 %v3522_v40  ;;  %154 = vmatpush.msra.mxu0 %v3508_v34  ;;  %v4819_v46 = vand.u32 4294901760, %v3522_v40  ;;  %v3546_v49 = vsub.f32 %v44_v10, %v3516_v38  ;;  %v3551_v51 = vsub.f32 %v42_v9, %v3518_v39 }
  0x15   :  { %v4817_v47 = vand.u32 4294901760, %v3525_v41  ;;  %v4815_v48 = vand.u32 4294901760, %v3529_v42  ;;  %350 = vmatpush.msra.mxu3 %v3508_v34  ;;  %v4814_v50 = vand.u32 4294901760, %v3532_v43  ;;  %v3554_v52 = vand.u32 4294901760, %v3398_v7 }
  0x16   :  { %298 = vmatpush.msra.mxu2 %v3525_v41  ;;  %156 = vmatpush.msra.mxu0 %v3510_v35  ;;  %v195_v53 = vsub.f32 %v3522_v40, %v4819_v46  ;;  %v4813_v56 = vand.u32 4294901760, %v3535_v44  ;;  %v3571_v57 = vsub.f32 %v3403_v8, %v3538_v45  ;;  %v3574_v58 = vand.u32 4294901760, %v3393_v6 }
  0x17   :  { %v201_v54 = vsub.f32 %v3525_v41, %v4817_v47  ;;  %v207_v55 = vsub.f32 %v3529_v42, %v4815_v48  ;;  %352 = vmatpush.msra.mxu3 %v3510_v35  ;;  %v213_v61 = vsub.f32 %v3532_v43, %v4814_v50  ;;  %v4811_v62 = vand.u32 4294901760, %v3546_v49 }
  0x18   :  { %4897 = vst [vmem:[#allocation10_spill] sm:$0xff] %v3574_v58  ;;  %v196_v59 = vand.u32 4294901760, %v195_v53  ;;  %301 = vmatpush.msra.mxu2 %v3529_v42  ;;  %158 = vmatpush.msra.mxu0 %v3512_v36  ;;  %v3585_v63 = vsub.f32 %v3398_v7, %v3554_v52  ;;  %v219_v9 = vsub.f32 %v3535_v44, %v4813_v56  ;;  %v4810_v10 = vand.u32 4294901760, %v3551_v51 }
  0x19   :  { %v202_v60 = vand.u32 4294901760, %v201_v54  ;;  %354 = vmatpush.msra.mxu3 %v3512_v36  ;;  %v208_v8 = vand.u32 4294901760, %v207_v55  ;;  %v3593_v11 = vand.u32 4294901760, %v3388_v5  ;;  %v3599_v7 = vsub.f32 %v3393_v6, %v3574_v58 }
  0x1a   :  { %197 = vmatpush.msra.mxu1 %v196_v59  ;;  %304 = vmatpush.msra.mxu2 %v3532_v43  ;;  %v214_v12 = vand.u32 4294901760, %v213_v61  ;;  %v225_v13 = vsub.f32 %v3546_v49, %v4811_v62  ;;  %v4809_v14 = vand.u32 4294901760, %v3571_v57  ;;  %v3607_v15 = vand.u32 4294901760, %v3383_v4 }
  0x1b   :  { %4898 = vst [vmem:[#allocation11_spill] sm:$0xff] %v3593_v11  ;;  %160 = vmatpush.msra.mxu0 %v3514_v37  ;;  %356 = vmatpush.msra.mxu3 %v3514_v37  ;;  %v4812_v6 = vand.u32 4294901760, %v3585_v63  ;;  %v220_v32 = vand.u32 4294901760, %v219_v9  ;;  %v231_v53 = vsub.f32 %v3551_v51, %v4810_v10  ;;  %v3618_v54 = vsub.f32 %v3388_v5, %v3593_v11 }
  0x1c   :  { %203 = vmatpush.msra.mxu1 %v202_v60  ;;  %307 = vmatpush.msra.mxu2 %v3535_v44  ;;  %4899 = vst [vmem:[#allocation12_spill] sm:$0xff] %v3607_v15  ;;  %v3621_v55 = vand.u32 4294901760, %v3378_v3  ;;  %v4816_v59 = vand.u32 4294901760, %v3599_v7  ;;  %v3627_v60 = vand.u32 4294901760, %v3373_v2  ;;  %v226_v61 = vand.u32 4294901760, %v225_v13 }
  0x1d   :  { %162 = vmatpush.msra.mxu0 %v3516_v38  ;;  %358 = vmatpush.msra.mxu3 %v3516_v38  ;;  %v237_v5 = vsub.f32 %v3571_v57, %v4809_v14  ;;  %v3638_v9 = vand.u32 4294901760, %v3504_v31  ;;  %v3646_v13 = vand.u32 4294901760, %v3368_v1  ;;  %v232_v14 = vand.u32 4294901760, %v231_v53 }
  0x1e   :  { %209 = vmatpush.msra.mxu1 %v208_v8  ;;  %310 = vmatpush.msra.mxu2 %v3546_v49  ;;  %4900 = vst [vmem:[#allocation13_spill] sm:$0xff] %v3621_v55  ;;  %v3635_v8 = vsub.f32 %v3383_v4, %v3607_v15  ;;  %v4818_v4 = vand.u32 4294901760, %v3618_v54  ;;  %v3652_v10 = vsub.f32 %v3378_v3, %v3621_v55  ;;  %v3655_v62 = vand.u32 4294901760, %v3499_v30 }
  0x1f   :  { %164 = vmatpush.msra.mxu0 %v3518_v39  ;;  %360 = vmatpush.msra.mxu3 %v3518_v39  ;;  %4901 = vst [vmem:[#allocation14_spill] sm:$0xff] %v3646_v13  ;;  %v3664_v53 = vsub.f32 %v3373_v2, %v3627_v60  ;;  %v238_v3 = vand.u32 4294901760, %v237_v5  ;;  %v3673_v50 = vsub.f32 %v3504_v31, %v3638_v9  ;;  %v3676_v48 = vand.u32 4294901760, %v3494_v29 }
  0x20   :  { %215 = vmatpush.msra.mxu1 %v214_v12  ;;  %313 = vmatpush.msra.mxu2 %v3551_v51  ;;  %v243_v12 = vsub.f32 %v3585_v63, %v4812_v6  ;;  %v3667_v6 = vand.u32 4294901760, %v3363_v0  ;;  %v4820_v56 = vand.u32 4294901760, %v3635_v8  ;;  %v255_v31 = vsub.f32 %v3618_v54, %v4818_v4 }
  0x21   :  { %166 = vmatpush.msra.mxu0 %v3538_v45  ;;  %362 = vmatpush.msra.mxu3 %v3538_v45  ;;  %4903 = vst [vmem:[#allocation16_spill] sm:$0xff] %v3673_v50  ;;  %v4823_v5 = vand.u32 4294901760, %v3652_v10  ;;  %v3708_v4 = vand.u32 4294901760, %v3673_v50  ;;  %v3715_v46 = vand.u32 4294901760, %v3484_v27  ;;  %vm3275_vm0 = vcmask 1040384  }
  0x22   :  { %221 = vmatpush.msra.mxu1 %v220_v32  ;;  %316 = vmatpush.msra.mxu2 %v3571_v57  ;;  %v249_v32 = vsub.f32 %v3599_v7, %v4816_v59  ;;  %4902 = vst [vmem:[#allocation15_spill] sm:$0xff] %v3667_v6  ;;  %v244_v2 = vand.u32 4294901760, %v243_v12  ;;  %v3691_v59 = vsub.f32 %v3499_v30, %v3655_v62  ;;  %v3694_v12 = vand.u32 4294901760, %v3489_v28 }
  0x23   :  { %168 = vmatpush.msra.mxu0 %v3554_v52  ;;  %364 = vmatpush.msra.mxu3 %v3554_v52  ;;  %v3701_v47 = vsub.f32 %v3363_v0, %v3667_v6  ;;  %v261_v30 = vsub.f32 %v3635_v8, %v4820_v56  ;;  %4905 = vst [vmem:[#allocation18_spill] sm:$0xff] %v3708_v4  ;;  %v256_v56 = vand.u32 4294901760, %v255_v31  ;;  %vm3277_vm1 = vcmask 1041408  }
  0x24   :  { %227 = vmatpush.msra.mxu1 %v226_v61  ;;  %319 = vmatpush.msra.mxu2 %v3585_v63  ;;  %v3682_v61 = vsub.f32 %v3368_v1, %v3646_v13  ;;  %4904 = vst [vmem:[#allocation17_spill] sm:$0xff] %v3691_v59  ;;  %v250_v1 = vand.u32 4294901760, %v249_v32  ;;  %v3712_v32 = vsub.f32 %v3494_v29, %v3676_v48  ;;  %vm3279_vm2 = vcmask 1042432  }
  0x25   :  { %170 = vmatpush.msra.mxu0 %v3574_v58  ;;  %366 = vmatpush.msra.mxu3 %v3574_v58  ;;  %v267_v29 = vsub.f32 %v3652_v10, %v4823_v5  ;;  %v262_v5 = vand.u32 4294901760, %v261_v30  ;;  %vm3281_vm3 = vcmask 1043456   ;;  %vm3283_vm4 = vcmask 1044480  }
  0x26   :  { %233 = vmatpush.msra.mxu1 %v232_v14  ;;  %322 = vmatpush.msra.mxu2 %v3599_v7  ;;  %4906 = vst [vmem:[#allocation19_spill] sm:$0xff] %v3712_v32  ;;  %v3728_v14 = vand.u32 4294901760, %v3691_v59  ;;  %v3747_v58 = vand.u32 4294901760, %v3712_v32  ;;  %vm3285_vm5 = vcmask 1045504   ;;  %vm3287_vm6 = vcmask 1046528  }
  0x27   :  { %172 = vmatpush.msra.mxu0 %v3593_v11  ;;  %368 = vmatpush.msra.mxu3 %v3593_v11  ;;  %v3732_v11 = vsub.f32 %v3489_v28, %v3694_v12  ;;  %v536_v28 = vsub.f32 %v3673_v50, %v3708_v4  ;;  %v268_v31 = vand.u32 4294901760, %v267_v29  ;;  %v3769_v50 = vand.u32 4294901760, %v3469_v24 }
  0x28   :  { %239 = vmatpush.msra.mxu1 %v238_v3  ;;  %325 = vmatpush.msra.mxu2 %v3618_v54  ;;  %v3721_v3 = vand.u32 4294901760, %v3479_v26  ;;  %4907 = vst [vmem:[#allocation20_spill] sm:$0xff] %v3728_v14 }
  0x29   :  { %174 = vmatpush.msra.mxu0 %v3607_v15  ;;  %370 = vmatpush.msra.mxu3 %v3607_v15  ;;  %v3741_v15 = vand.u32 4294901760, %v3474_v25  ;;  %4909 = vst [vmem:[#allocation21_spill] sm:$0xff] %v3747_v58  ;;  %v3766_v4 = vand.u32 4294901760, %v3732_v11 }
  0x2a   :  { %245 = vmatpush.msra.mxu1 %v244_v2  ;;  %328 = vmatpush.msra.mxu2 %v3635_v8  ;;  %v4908_v2 = vand.u32 4294901760, %v3664_v53  ;;  %v3760_v30 = vsub.f32 %v3479_v26, %v3721_v3  ;;  %v4912_v26 = vand.u32 4294901760, %v3701_v47 }
  0x2b   :  { %176 = vmatpush.msra.mxu0 %v3621_v55  ;;  %372 = vmatpush.msra.mxu3 %v3621_v55  ;;  %v3751_v55 = vsub.f32 %v3484_v27, %v3715_v46  ;;  %v542_v27 = vsub.f32 %v3691_v59, %v3728_v14  ;;  %4911 = vst [vmem:[#allocation22_spill] sm:$0xff] %v3766_v4  ;;  %v3781_v14 = vand.u32 4294901760, %v536_v28 }
  0x2c   :  { %v273_v0 = vsub.f32 %v3664_v53, %v4908_v2  ;;  %251 = vmatpush.msra.mxu1 %v250_v1  ;;  %331 = vmatpush.msra.mxu2 %v3652_v10  ;;  %v4910_v2 = vand.u32 4294901760, %v3682_v61  ;;  %v3778_v29 = vsub.f32 %v3474_v25, %v3741_v15  ;;  %v548_v59 = vsub.f32 %v3712_v32, %v3747_v58 }
  0x2d   :  { %178 = vmatpush.msra.mxu0 %v3627_v60  ;;  %374 = vmatpush.msra.mxu3 %v3627_v60  ;;  %4913 = vst [vmem:[#allocation23_spill] sm:$0xff] %v3781_v14  ;;  %v3794_v25 = vand.u32 4294901760, %v3760_v30  ;;  %v554_v28 = vsub.f32 %v3732_v11, %v3766_v4  ;;  %v3803_v58 = vsub.f32 %v3469_v24, %v3769_v50  ;;  %v3806_v32 = vand.u32 4294901760, %v3459_v22 }
  0x2e   :  { %v279_v1 = vsub.f32 %v3682_v61, %v4910_v2  ;;  %257 = vmatpush.msra.mxu1 %v256_v56  ;;  %334 = vmatpush.msra.mxu2 %v3664_v53  ;;  %v274_v2 = vand.u32 4294901760, %v273_v0  ;;  %v285_v56 = vsub.f32 %v3701_v47, %v4912_v26  ;;  %v3786_v0 = vand.u32 4294901760, %v3751_v55 }
  0x2f   :  { %180 = vmatpush.msra.mxu0 %v3646_v13  ;;  %376 = vmatpush.msra.mxu3 %v3646_v13  ;;  %v3789_v13 = vand.u32 4294901760, %v3464_v23 }
  0x30   :  { %263 = vmatpush.msra.mxu1 %v262_v5  ;;  %337 = vmatpush.msra.mxu2 %v3682_v61  ;;  %v280_v26 = vand.u32 4294901760, %v279_v1  ;;  %v3797_v5 = vand.u32 4294901760, %v542_v27  ;;  %v4915_v1 = vand.u32 4294901760, %v3522_v40  ;;  %v3815_v27 = vand.u32 4294901760, %v548_v59 }
  0x31   :  { %182 = vmatpush.msra.mxu0 %v3667_v6  ;;  %378 = vmatpush.msra.mxu3 %v3667_v6  ;;  %v3812_v6 = vand.u32 4294901760, %v3778_v29  ;;  %v560_v24 = vsub.f32 %v3751_v55, %v3786_v0  ;;  %v3821_v4 = vsub.f32 %v3464_v23, %v3789_v13  ;;  %v3824_v40 = vand.u32 4294901760, %v3454_v21 }
  0x32   :  { %269 = vmatpush.msra.mxu1 %v268_v31  ;;  %340 = vmatpush.msra.mxu2 %v3701_v47  ;;  %4914 = vst [vmem:[#allocation24_spill] sm:$0xff] %v3797_v5  ;;  %v286_v31 = vand.u32 4294901760, %v285_v56  ;;  %v4917_v56 = vand.u32 4294901760, %v3525_v41  ;;  %v3832_v59 = vand.u32 4294901760, %v554_v28  ;;  %v3839_v23 = vsub.f32 %v3459_v22, %v3806_v32 }
  0x33   :  { %389 = vmatpush.msrb.mxu0 %v4915_v1  ;;  %538 = vmatpush.msrb.mxu3 %v3781_v14  ;;  %4916 = vst [vmem:[#allocation25_spill] sm:$0xff] %v3815_v27  ;;  %v3835_v1 = vand.u32 4294901760, %v3803_v58  ;;  %v3842_v41 = vand.u32 4294901760, %v3449_v20  ;;  %v3850_v28 = vand.u32 4294901760, %v560_v24  ;;  %v3857_v22 = vsub.f32 %v3454_v21, %v3824_v40 }
  0x34   :  { %493 = vmatpush.msrb.mxu2 %v3638_v9  ;;  %275 = vmatpush.msra.mxu1 %v274_v2  ;;  %v566_v2 = vsub.f32 %v3760_v30, %v3794_v25  ;;  %4918 = vst [vmem:[#allocation26_spill] sm:$0xff] %v3832_v59  ;;  %v3872_v21 = vand.u32 4294901760, %v3839_v23 }
  0x35   :  { %393 = vmatpush.msrb.mxu0 %v4917_v56  ;;  %544 = vmatpush.msrb.mxu3 %v3797_v5  ;;  %v4919_v56 = vand.u32 4294901760, %v3529_v42  ;;  %4920 = vst [vmem:[#allocation27_spill] sm:$0xff] %v3850_v28  ;;  %v3853_v5 = vand.u32 4294901760, %v3821_v4  ;;  %v3860_v42 = vand.u32 4294901760, %v3444_v19  ;;  %v578_v24 = vsub.f32 %v3803_v58, %v3835_v1 }
  0x36   :  { %495 = vmatpush.msrb.mxu2 %v3655_v62  ;;  %281 = vmatpush.msra.mxu1 %v280_v26  ;;  %v572_v26 = vsub.f32 %v3778_v29, %v3812_v6 }
  0x37   :  { %397 = vmatpush.msrb.mxu0 %v4919_v56  ;;  %550 = vmatpush.msrb.mxu3 %v3815_v27  ;;  %v4921_v56 = vand.u32 4294901760, %v3532_v43  ;;  %v3876_v27 = vsub.f32 %v3449_v20, %v3842_v41  ;;  %v4923_v43 = vand.u32 4294901760, %v3535_v44  ;;  %v3891_v20 = vand.u32 4294901760, %v3857_v22  ;;  %v134_v44 = vld [vmem:[%s4805_s0] sm:$0xff] }
  0x38   :  { %497 = vmatpush.msrb.mxu2 %v3676_v48  ;;  %287 = vmatpush.msra.mxu1 %v286_v31  ;;  %v3865_v31 = vand.u32 4294901760, %v566_v2  ;;  %v3884_v2 = vand.u32 4294901760, %v572_v26  ;;  %v4926_v26 = vand.u32 4294901760, %v3546_v49  ;;  %v3922_v49 = vand.u32 4294901760, %v134_v44 }
  0x39   :  { %401 = vmatpush.msrb.mxu0 %v4921_v56  ;;  %556 = vmatpush.msrb.mxu3 %v3832_v59  ;;  %v584_v56 = vsub.f32 %v3821_v4, %v3853_v5  ;;  %v3895_v59 = vsub.f32 %v3444_v19, %v3860_v42  ;;  %v590_v19 = vsub.f32 %v3839_v23, %v3872_v21 }
  0x3a   :  { %456 = vmatpush.msrb.mxu1 %v3506_v33  ;;  %4922 = vst [vmem:[#allocation28_spill] sm:$0xff] %v3865_v31  ;;  %499 = vmatpush.msrb.mxu2 %v3694_v12  ;;  %v3879_v33 = vand.u32 4294901760, %v3439_v18 }
  0x3b   :  { %405 = vmatpush.msrb.mxu0 %v4923_v43  ;;  %4924 = vst [vmem:[#allocation29_spill] sm:$0xff] %v3884_v2  ;;  %562 = vmatpush.msrb.mxu3 %v3850_v28  ;;  %v3908_v43 = vand.u32 4294901760, %v578_v24  ;;  %v3913_v28 = vand.u32 4294901760, %v3876_v27  ;;  %v3926_v24 = vand.u32 4294901760, %v584_v56 }
  0x3c   :  { %458 = vmatpush.msrb.mxu1 %v3508_v34  ;;  %501 = vmatpush.msrb.mxu2 %v3715_v46  ;;  %4925 = vst [vmem:[#allocation30_spill] sm:$0xff] %v3895_v59  ;;  %v3898_v34 = vand.u32 4294901760, %v3434_v17  ;;  %v3917_v14 = vsub.f32 %v3439_v18, %v3879_v33 }
  0x3d   :  { %409 = vmatpush.msrb.mxu0 %v4926_v26  ;;  %568 = vmatpush.msrb.mxu3 %v3865_v31  ;;  %4927 = vst [vmem:[#allocation31_spill] sm:$0xff] %v3908_v43  ;;  %v596_v26 = vsub.f32 %v3857_v22, %v3891_v20  ;;  %v3931_v31 = vand.u32 4294901760, %v3895_v59  ;;  %v602_v56 = vsub.f32 %v3876_v27, %v3913_v28 }
  0x3e   :  { %460 = vmatpush.msrb.mxu1 %v3510_v35  ;;  %503 = vmatpush.msrb.mxu2 %v3721_v3  ;;  %4928 = vst [vmem:[#allocation32_spill] sm:$0xff] %v3917_v14  ;;  %v4929_v35 = vand.u32 4294901760, %v3551_v51  ;;  %v3935_v18 = vsub.f32 %v3434_v17, %v3898_v34  ;;  %v3942_v51 = vand.u32 4294901760, %v590_v19  ;;  %v3950_v17 = vand.u32 4294901760, %v3429_v16 }
  0x3f   :  { %574 = vmatpush.msrb.mxu3 %v3884_v2  ;;  %4930 = vst [vmem:[#allocation33_spill] sm:$0xff] %v3926_v24  ;;  %v3958_v19 = vand.u32 4294901760, %v596_v26  ;;  %289 = vmatmul.f32.vlgmr.msra.gmra.mxu1 %v3922_v49 }
  0x40   :  { %462 = vmatpush.msrb.mxu1 %v3512_v36  ;;  %413 = vmatpush.msrb.mxu0 %v4929_v35  ;;  %4931 = vst [vmem:[#allocation34_spill] sm:$0xff] %v3935_v18  ;;  %v4932_v36 = vand.u32 4294901760, %v3571_v57  ;;  %v3947_v35 = vand.u32 4294901760, %v3917_v14  ;;  %v184_v57 = vsub.f32 %v134_v44, %v3922_v49  ;;  %v3976_v26 = vsub.f32 %v3429_v16, %v3950_v17 }
  0x41   :  { %505 = vmatpush.msrb.mxu2 %v3741_v15  ;;  %580 = vmatpush.msrb.mxu3 %v3908_v43  ;;  %4933 = vst [vmem:[#allocation35_spill] sm:$0xff] %v3942_v51  ;;  %v3963_v43 = vand.u32 4294901760, %v3935_v18  ;;  %v4943_v16 = vand.u32 4294901760, %v3635_v8  ;;  %v4949_v8 = vld [vmem:[#allocation11_spill] sm:$0xff] }
  0x42   :  { %464 = vmatpush.msrb.mxu1 %v3514_v37  ;;  %417 = vmatpush.msrb.mxu0 %v4932_v36  ;;  %4934 = vst [vmem:[#allocation36_spill] sm:$0xff] %v3947_v35  ;;  %v4935_v37 = vand.u32 4294901760, %v3585_v63  ;;  %v608_v36 = vsub.f32 %v3895_v59, %v3931_v31  ;;  %v3970_v63 = vand.u32 4294901760, %v602_v56  ;;  %v614_v44 = vsub.f32 %v3917_v14, %v3947_v35 }
  0x43   :  { %507 = vmatpush.msrb.mxu2 %v3769_v50  ;;  %586 = vmatpush.msrb.mxu3 %v3926_v24  ;;  %4936 = vst [vmem:[#allocation37_spill] sm:$0xff] %v3958_v19  ;;  %v620_v56 = vsub.f32 %v3935_v18, %v3963_v43 }
  0x44   :  { %466 = vmatpush.msrb.mxu1 %v3516_v38  ;;  %421 = vmatpush.msrb.mxu0 %v4935_v37  ;;  %4937 = vst [vmem:[#allocation38_spill] sm:$0xff] %v3963_v43  ;;  %v4938_v38 = vand.u32 4294901760, %v3599_v7  ;;  %v185_v7 = vand.u32 4294901760, %v184_v57  ;;  %v3983_v37 = vand.u32 4294901760, %v608_v36  ;;  %v4947_v36 = vand.u32 4294901760, %v3652_v10 }
  0x45   :  { %509 = vmatpush.msrb.mxu2 %v3789_v13  ;;  %592 = vmatpush.msrb.mxu3 %v3942_v51  ;;  %4939 = vst [vmem:[#allocation39_spill] sm:$0xff] %v3970_v63 }
  0x46   :  { %468 = vmatpush.msrb.mxu1 %v3518_v39  ;;  %425 = vmatpush.msrb.mxu0 %v4938_v38  ;;  %4940 = vst [vmem:[#allocation40_spill] sm:$0xff] %v3976_v26  ;;  %v4941_v39 = vand.u32 4294901760, %v3618_v54  ;;  %v3995_v54 = vand.u32 4294901760, %v3976_v26  ;;  %v4946_v38 = vld [vmem:[#allocation10_spill] sm:$0xff] }
  0x47   :  { %511 = vmatpush.msrb.mxu2 %v3806_v32  ;;  %598 = vmatpush.msrb.mxu3 %v3958_v19  ;;  %4942 = vst [vmem:[#allocation41_spill] sm:$0xff] %v3983_v37 }
  0x48   :  { %470 = vmatpush.msrb.mxu1 %v3538_v45  ;;  %429 = vmatpush.msrb.mxu0 %v4941_v39  ;;  %v3992_v45 = vand.u32 4294901760, %v614_v44  ;;  %4945 = vst [vmem:[#allocation43_spill] sm:$0xff] %v3995_v54  ;;  %v186_v39 = vsub.f32 %v184_v57, %v185_v7  ;;  %v4950_v44 = vand.u32 4294901760, %v3664_v53  ;;  %v626_v10 = vsub.f32 %v3976_v26, %v3995_v54 }
  0x49   :  { %513 = vmatpush.msrb.mxu2 %v3824_v40  ;;  %604 = vmatpush.msrb.mxu3 %v3970_v63  ;;  %v4954_v53 = vand.u32 4294901760, %v3701_v47  ;;  %v4959_v47 = vld [vmem:[#allocation17_spill] sm:$0xff] }
  0x4a   :  { %472 = vmatpush.msrb.mxu1 %v3554_v52  ;;  %433 = vmatpush.msrb.mxu0 %v4943_v16  ;;  %4944 = vst [vmem:[#allocation42_spill] sm:$0xff] %v3992_v45  ;;  %v4002_v52 = vand.u32 4294901760, %v620_v56  ;;  %v4951_v16 = vld [vmem:[#allocation12_spill] sm:$0xff]  ;;  %v4953_v56 = vld [vmem:[#allocation13_spill] sm:$0xff] }
  0x4b   :  { %515 = vmatpush.msrb.mxu2 %v3842_v41  ;;  %610 = vmatpush.msrb.mxu3 %v3983_v37 }
  0x4c   :  { %474 = vmatpush.msrb.mxu1 %v4946_v38  ;;  %437 = vmatpush.msrb.mxu0 %v4947_v36  ;;  %4948 = vst [vmem:[#allocation10_spill] sm:$0xff] %v4002_v52  ;;  %v4952_v38 = vand.u32 4294901760, %v3682_v61  ;;  %v187_v36 = vand.u32 4294901760, %v186_v39  ;;  %v4956_v61 = vld [vmem:[#allocation16_spill] sm:$0xff]  ;;  %v4957_v39 = vld [vmem:[#allocation18_spill] sm:$0xff] }
  0x4d   :  { %517 = vmatpush.msrb.mxu2 %v3860_v42  ;;  %616 = vmatpush.msrb.mxu3 %v3992_v45 }
  0x4e   :  { %476 = vmatpush.msrb.mxu1 %v4949_v8  ;;  %441 = vmatpush.msrb.mxu0 %v4950_v44  ;;  %v4020_v8 = vand.u32 4294901760, %v626_v10  ;;  %v4958_v44 = vld [vmem:[#allocation14_spill] sm:$0xff]  ;;  %v117_v10 = vld [vmem:[#allocation4] sm:$0x1] }
  0x4f   :  { %519 = vmatpush.msrb.mxu2 %v3879_v33  ;;  %622 = vmatpush.msrb.mxu3 %v4002_v52 }
  0x50   :  { %478 = vmatpush.msrb.mxu1 %v4951_v16  ;;  %445 = vmatpush.msrb.mxu0 %v4952_v38  ;;  %4955 = vst [vmem:[#allocation11_spill] sm:$0xff] %v4020_v8  ;;  %v4963_v16 = vld [vmem:[#allocation21_spill] sm:$0xff]  ;;  %v4036_v38 = vand.u32 4294901760, %v117_v10 }
  0x51   :  { %521 = vmatpush.msrb.mxu2 %v3898_v34  ;;  %188 = vmatmul.f32.vlgmr.msra.gmra.mxu0 %v187_v36  ;;  %v4964_v36 = vld [vmem:[#allocation22_spill] sm:$0xff] }
  0x52   :  { %480 = vmatpush.msrb.mxu1 %v4953_v56  ;;  %343 = vmatmul.f32.vlgmr.msra.gmra.mxu2 %v184_v57  ;;  %v4960_v57 = vld [vmem:[#allocation20_spill] sm:$0xff]  ;;  %v525_v56 = vsub.f32 %v117_v10, %v4036_v38  ;;  %v4965_v10 = vld [vmem:[#allocation23_spill] sm:$0xff] }
  0x53   :  { %449 = vmatpush.msrb.mxu0 %v4954_v53  ;;  %523 = vmatpush.msrb.mxu2 %v3950_v17 }
  0x54   :  { %482 = vmatpush.msrb.mxu1 %v3627_v60  ;;  %382 = vmatmul.f32.vlgmr.msra.gmra.mxu3 %v185_v7  ;;  %v4961_v60 = vld [vmem:[#allocation15_spill] sm:$0xff]  ;;  %v526_v53 = vand.u32 4294901760, %v525_v56 }
  0x55   :  { %636 = vmatpush.msra.mxu0 %v4956_v61  ;;  %730 = vmatpush.msra.mxu2 %v4957_v39  ;;  %v4962_v7 = vld [vmem:[#allocation19_spill] sm:$0xff] }
  0x56   :  { %484 = vmatpush.msrb.mxu1 %v4958_v44  ;;  %628 = vmatpush.msrb.mxu3 %v4020_v8 }
  0x57   :  { %639 = vmatpush.msra.mxu0 %v4959_v47  ;;  %734 = vmatpush.msra.mxu2 %v4960_v57 }
  0x58   :  { %797 = vmatpush.msra.mxu3 %v3638_v9  ;;  %486 = vmatpush.msrb.mxu1 %v4961_v60  ;;  %v4966_v60 = vld [vmem:[#allocation24_spill] sm:$0xff] }
  0x59   :  { %642 = vmatpush.msra.mxu0 %v4962_v7  ;;  %738 = vmatpush.msra.mxu2 %v4963_v16 }
  0x5a   :  { %689 = vmatpush.msra.mxu1 %v3638_v9  ;;  %799 = vmatpush.msra.mxu3 %v3655_v62 }
  0x5b   :  { %645 = vmatpush.msra.mxu0 %v3732_v11  ;;  %742 = vmatpush.msra.mxu2 %v4964_v36 }
  0x5c   :  { %691 = vmatpush.msra.mxu1 %v3655_v62  ;;  %801 = vmatpush.msra.mxu3 %v3676_v48 }
  0x5d   :  { %451 = vmatmul.f32.vlgmr.msrb.gmra.mxu0 %v3922_v49  ;;  %746 = vmatpush.msra.mxu2 %v3786_v0 }
  0x5e   :  { %693 = vmatpush.msra.mxu1 %v3676_v48  ;;  %648 = vmatpush.msra.mxu0 %v3751_v55 }
  0x5f   :  { %803 = vmatpush.msra.mxu3 %v3694_v12  ;;  %488 = vmatmul.f32.vlgmr.msrb.gmra.mxu1 %v3922_v49  ;;  %v527_v49 = vsub.f32 %v525_v56, %v526_v53 }
  0x60   :  { %651 = vmatpush.msra.mxu0 %v3760_v30  ;;  %695 = vmatpush.msra.mxu1 %v3694_v12 }
  0x61   :  { %750 = vmatpush.msra.mxu2 %v3794_v25  ;;  %805 = vmatpush.msra.mxu3 %v3715_v46  ;;  %v528_v44 = vand.u32 4294901760, %v527_v49  ;;  %v4970_v49 = vld [vmem:[#allocation28_spill] sm:$0xff] }
  0x62   :  { %654 = vmatpush.msra.mxu0 %v3778_v29  ;;  %697 = vmatpush.msra.mxu1 %v3715_v46 }
  0x63   :  { %754 = vmatpush.msra.mxu2 %v3812_v6  ;;  %807 = vmatpush.msra.mxu3 %v3721_v3 }
  0x64   :  { %657 = vmatpush.msra.mxu0 %v3803_v58  ;;  %699 = vmatpush.msra.mxu1 %v3721_v3 }
  0x65   :  { %758 = vmatpush.msra.mxu2 %v3835_v1  ;;  %809 = vmatpush.msra.mxu3 %v3741_v15 }
  0x66   :  { %660 = vmatpush.msra.mxu0 %v3821_v4  ;;  %701 = vmatpush.msra.mxu1 %v3741_v15 }
  0x67   :  { %762 = vmatpush.msra.mxu2 %v3853_v5  ;;  %811 = vmatpush.msra.mxu3 %v3769_v50 }
  0x68   :  { %663 = vmatpush.msra.mxu0 %v3839_v23  ;;  %703 = vmatpush.msra.mxu1 %v3769_v50 }
  0x69   :  { %766 = vmatpush.msra.mxu2 %v3872_v21  ;;  %813 = vmatpush.msra.mxu3 %v3789_v13 }
  0x6a   :  { %666 = vmatpush.msra.mxu0 %v3857_v22  ;;  %705 = vmatpush.msra.mxu1 %v3789_v13 }
  0x6b   :  { %770 = vmatpush.msra.mxu2 %v3891_v20  ;;  %815 = vmatpush.msra.mxu3 %v3806_v32 }
  0x6c   :  { %669 = vmatpush.msra.mxu0 %v3876_v27  ;;  %707 = vmatpush.msra.mxu1 %v3806_v32 }
  0x6d   :  { %774 = vmatpush.msra.mxu2 %v3913_v28  ;;  %817 = vmatpush.msra.mxu3 %v3824_v40 }
  0x6e   :  { %529 = vmatmul.f32.vlgmr.msrb.gmra.mxu2 %v528_v44  ;;  %630 = vmatmul.f32.vlgmr.msrb.gmra.mxu3 %v4036_v38  ;;  %v4971_v44 = vld [vmem:[#allocation31_spill] sm:$0xff] }
  0x6f   :  { %672 = vmatpush.msra.mxu0 %v3895_v59  ;;  %709 = vmatpush.msra.mxu1 %v3824_v40 }
  0x70   :  { %778 = vmatpush.msra.mxu2 %v3931_v31  ;;  %819 = vmatpush.msra.mxu3 %v3842_v41 }
  0x71   :  { %675 = vmatpush.msra.mxu0 %v3917_v14  ;;  %711 = vmatpush.msra.mxu1 %v3842_v41 }
  0x72   :  { %782 = vmatpush.msra.mxu2 %v3947_v35  ;;  %821 = vmatpush.msra.mxu3 %v3860_v42 }
  0x73   :  { %678 = vmatpush.msra.mxu0 %v3935_v18  ;;  %713 = vmatpush.msra.mxu1 %v3860_v42 }
  0x74   :  { %786 = vmatpush.msra.mxu2 %v3963_v43  ;;  %823 = vmatpush.msra.mxu3 %v3879_v33 }
  0x75   :  { %681 = vmatpush.msra.mxu0 %v3976_v26  ;;  %715 = vmatpush.msra.mxu1 %v3879_v33 }
  0x76   :  { %790 = vmatpush.msra.mxu2 %v3995_v54  ;;  %825 = vmatpush.msra.mxu3 %v3898_v34 }
  0x77   :  { %684 = vmatmul.f32.vlgmr.msra.gmra.mxu0 %v525_v56  ;;  %792 = vmatmul.f32.vlgmr.msra.gmra.mxu2 %v4036_v38  ;;  %v4968_v56 = vld [vmem:[#allocation26_spill] sm:$0xff] }
  0x78   :  { %717 = vmatpush.msra.mxu1 %v3898_v34  ;;  %827 = vmatpush.msra.mxu3 %v3950_v17 }
  0x79   :  { %829 = vmatmul.f32.vlgmr.msra.gmra.mxu3 %v4036_v38  ;;  %836 = vmatpush.msrb.mxu0 %v3638_v9  ;;  %v4967_v38 = vld [vmem:[#allocation25_spill] sm:$0xff] }
  0x7a   :  { %719 = vmatpush.msra.mxu1 %v3950_v17  ;;  %979 = vmatpush.msrb.mxu2 %v4956_v61 }
  0x7b   :  { %723 = vmatmul.f32.vlgmr.msra.gmra.mxu1 %v526_v53  ;;  %838 = vmatpush.msrb.mxu0 %v3655_v62  ;;  %v4969_v53 = vld [vmem:[#allocation27_spill] sm:$0xff] }
  0x7c   :  { %881 = vmatpush.msrb.mxu1 %v4965_v10  ;;  %982 = vmatpush.msrb.mxu2 %v4959_v47 }
  0x7d   :  { %840 = vmatpush.msrb.mxu0 %v3676_v48  ;;  %1032 = vmatpush.msrb.mxu3 %v3638_v9 }
  0x7e   :  { %887 = vmatpush.msrb.mxu1 %v4966_v60  ;;  %985 = vmatpush.msrb.mxu2 %v4962_v7 }
  0x7f   :  { %842 = vmatpush.msrb.mxu0 %v3694_v12  ;;  %1034 = vmatpush.msrb.mxu3 %v3655_v62 }
  0x80   :  { %893 = vmatpush.msrb.mxu1 %v4967_v38  ;;  %988 = vmatpush.msrb.mxu2 %v3732_v11 }
  0x81   :  { %844 = vmatpush.msrb.mxu0 %v3715_v46  ;;  %1036 = vmatpush.msrb.mxu3 %v3676_v48 }
  0x82   :  { %899 = vmatpush.msrb.mxu1 %v4968_v56  ;;  %991 = vmatpush.msrb.mxu2 %v3751_v55 }
  0x83   :  { %846 = vmatpush.msrb.mxu0 %v3721_v3  ;;  %1038 = vmatpush.msrb.mxu3 %v3694_v12 }
  0x84   :  { %905 = vmatpush.msrb.mxu1 %v4969_v53  ;;  %994 = vmatpush.msrb.mxu2 %v3760_v30 }
  0x85   :  { %848 = vmatpush.msrb.mxu0 %v3741_v15  ;;  %1040 = vmatpush.msrb.mxu3 %v3715_v46 }
  0x86   :  { %911 = vmatpush.msrb.mxu1 %v4970_v49  ;;  %997 = vmatpush.msrb.mxu2 %v3778_v29 }
  0x87   :  { %850 = vmatpush.msrb.mxu0 %v3769_v50  ;;  %1042 = vmatpush.msrb.mxu3 %v3721_v3 }
  0x88   :  { %917 = vmatpush.msrb.mxu1 %v3884_v2  ;;  %1000 = vmatpush.msrb.mxu2 %v3803_v58 }
  0x89   :  { %852 = vmatpush.msrb.mxu0 %v3789_v13  ;;  %1044 = vmatpush.msrb.mxu3 %v3741_v15 }
  0x8a   :  { %923 = vmatpush.msrb.mxu1 %v4971_v44  ;;  %1003 = vmatpush.msrb.mxu2 %v3821_v4 }
  0x8b   :  { %854 = vmatpush.msrb.mxu0 %v3806_v32  ;;  %1046 = vmatpush.msrb.mxu3 %v3769_v50 }
  0x8c   :  { %929 = vmatpush.msrb.mxu1 %v3926_v24  ;;  %1006 = vmatpush.msrb.mxu2 %v3839_v23 }
  0x8d   :  { %856 = vmatpush.msrb.mxu0 %v3824_v40  ;;  %1048 = vmatpush.msrb.mxu3 %v3789_v13 }
  0x8e   :  { %935 = vmatpush.msrb.mxu1 %v3942_v51  ;;  %1009 = vmatpush.msrb.mxu2 %v3857_v22 }
  0x8f   :  { %858 = vmatpush.msrb.mxu0 %v3842_v41  ;;  %1050 = vmatpush.msrb.mxu3 %v3806_v32 }
  0x90   :  { %941 = vmatpush.msrb.mxu1 %v3958_v19  ;;  %1012 = vmatpush.msrb.mxu2 %v3876_v27 }
  0x91   :  { %860 = vmatpush.msrb.mxu0 %v3860_v42  ;;  %1052 = vmatpush.msrb.mxu3 %v3824_v40 }
  0x92   :  { %947 = vmatpush.msrb.mxu1 %v3970_v63  ;;  %1015 = vmatpush.msrb.mxu2 %v3895_v59 }
  0x93   :  { %862 = vmatpush.msrb.mxu0 %v3879_v33  ;;  %1054 = vmatpush.msrb.mxu3 %v3842_v41 }
  0x94   :  { %953 = vmatpush.msrb.mxu1 %v3983_v37  ;;  %1018 = vmatpush.msrb.mxu2 %v3917_v14 }
  0x95   :  { %864 = vmatpush.msrb.mxu0 %v3898_v34  ;;  %1056 = vmatpush.msrb.mxu3 %v3860_v42 }
  0x96   :  { %959 = vmatpush.msrb.mxu1 %v3992_v45  ;;  %1021 = vmatpush.msrb.mxu2 %v3935_v18 }
  0x97   :  { %866 = vmatpush.msrb.mxu0 %v3950_v17  ;;  %1058 = vmatpush.msrb.mxu3 %v3879_v33 }
  0x98   :  { %965 = vmatpush.msrb.mxu1 %v4002_v52  ;;  %1024 = vmatpush.msrb.mxu2 %v3976_v26 }
  0x99   :  { %1073 = vmatpush.msra.mxu0 %v4957_v39  ;;  %1060 = vmatpush.msrb.mxu3 %v3898_v34 }
  0x9a   :  { %971 = vmatpush.msrb.mxu1 %v4020_v8  ;;  %1185 = vmatpush.msra.mxu2 %v3638_v9 }
  0x9b   :  { %1077 = vmatpush.msra.mxu0 %v4960_v57  ;;  %1062 = vmatpush.msrb.mxu3 %v3950_v17 }
  0x9c   :  { %1140 = vmatpush.msra.mxu1 %v3638_v9  ;;  %1187 = vmatpush.msra.mxu2 %v3655_v62 }
  0x9d   :  { %1081 = vmatpush.msra.mxu0 %v4963_v16  ;;  %1230 = vmatpush.msra.mxu3 %v4965_v10 }
  0x9e   :  { %1142 = vmatpush.msra.mxu1 %v3655_v62  ;;  %1189 = vmatpush.msra.mxu2 %v3676_v48 }
  0x9f   :  { %1085 = vmatpush.msra.mxu0 %v4964_v36  ;;  %1236 = vmatpush.msra.mxu3 %v4966_v60 }
  0xa0   :  { %1144 = vmatpush.msra.mxu1 %v3676_v48  ;;  %1191 = vmatpush.msra.mxu2 %v3694_v12 }
  0xa1   :  { %1089 = vmatpush.msra.mxu0 %v3786_v0  ;;  %1242 = vmatpush.msra.mxu3 %v4967_v38 }
  0xa2   :  { %1146 = vmatpush.msra.mxu1 %v3694_v12  ;;  %1193 = vmatpush.msra.mxu2 %v3715_v46 }
  0xa3   :  { %1093 = vmatpush.msra.mxu0 %v3794_v25  ;;  %1248 = vmatpush.msra.mxu3 %v4968_v56 }
  0xa4   :  { %1148 = vmatpush.msra.mxu1 %v3715_v46  ;;  %1195 = vmatpush.msra.mxu2 %v3721_v3 }
  0xa5   :  { %1097 = vmatpush.msra.mxu0 %v3812_v6  ;;  %1254 = vmatpush.msra.mxu3 %v4969_v53 }
  0xa6   :  { %1150 = vmatpush.msra.mxu1 %v3721_v3  ;;  %1197 = vmatpush.msra.mxu2 %v3741_v15 }
  0xa7   :  { %1101 = vmatpush.msra.mxu0 %v3835_v1  ;;  %1260 = vmatpush.msra.mxu3 %v4970_v49 }
  0xa8   :  { %1152 = vmatpush.msra.mxu1 %v3741_v15  ;;  %1199 = vmatpush.msra.mxu2 %v3769_v50 }
  0xa9   :  { %1105 = vmatpush.msra.mxu0 %v3853_v5  ;;  %1266 = vmatpush.msra.mxu3 %v3884_v2 }
  0xaa   :  { %1154 = vmatpush.msra.mxu1 %v3769_v50  ;;  %1201 = vmatpush.msra.mxu2 %v3789_v13 }
  0xab   :  { %1109 = vmatpush.msra.mxu0 %v3872_v21  ;;  %1272 = vmatpush.msra.mxu3 %v4971_v44 }
  0xac   :  { %1156 = vmatpush.msra.mxu1 %v3789_v13  ;;  %1203 = vmatpush.msra.mxu2 %v3806_v32 }
  0xad   :  { %1113 = vmatpush.msra.mxu0 %v3891_v20  ;;  %1278 = vmatpush.msra.mxu3 %v3926_v24 }
  0xae   :  { %1158 = vmatpush.msra.mxu1 %v3806_v32  ;;  %1205 = vmatpush.msra.mxu2 %v3824_v40 }
  0xaf   :  { %1117 = vmatpush.msra.mxu0 %v3913_v28  ;;  %1284 = vmatpush.msra.mxu3 %v3942_v51 }
  0xb0   :  { %1160 = vmatpush.msra.mxu1 %v3824_v40  ;;  %1207 = vmatpush.msra.mxu2 %v3842_v41 }
  0xb1   :  { %1121 = vmatpush.msra.mxu0 %v3931_v31  ;;  %1290 = vmatpush.msra.mxu3 %v3958_v19 }
  0xb2   :  { %1162 = vmatpush.msra.mxu1 %v3842_v41  ;;  %1209 = vmatpush.msra.mxu2 %v3860_v42 }
  0xb3   :  { %1125 = vmatpush.msra.mxu0 %v3947_v35  ;;  %1296 = vmatpush.msra.mxu3 %v3970_v63 }
  0xb4   :  { %1164 = vmatpush.msra.mxu1 %v3860_v42  ;;  %1211 = vmatpush.msra.mxu2 %v3879_v33 }
  0xb5   :  { %1129 = vmatpush.msra.mxu0 %v3963_v43  ;;  %1302 = vmatpush.msra.mxu3 %v3983_v37 }
  0xb6   :  { %1166 = vmatpush.msra.mxu1 %v3879_v33  ;;  %1213 = vmatpush.msra.mxu2 %v3898_v34 }
  0xb7   :  { %1133 = vmatpush.msra.mxu0 %v3995_v54  ;;  %1308 = vmatpush.msra.mxu3 %v3992_v45 }
  0xb8   :  { %1168 = vmatpush.msra.mxu1 %v3898_v34  ;;  %1215 = vmatpush.msra.mxu2 %v3950_v17 }
  0xb9   :  { %1314 = vmatpush.msra.mxu3 %v4002_v52 }
  0xba   :  { %1170 = vmatpush.msra.mxu1 %v3950_v17 }
  0xbb   :  { %1320 = vmatpush.msra.mxu3 %v4020_v8 }
  0xbc   :  { %v290_v63 = vpop.f32.mrf.mxu1 }
  0xce   :  { %v189_v37 = vpop.f32.mrf.mxu0 }
  0xcf   :  { %v291_v45 = vadd.f32 %v290_v63, %v189_v37  ;;  %v4977_v37 = vld [vmem:[#allocation24_spill] sm:$0xff] }
  0xd5   :  { %v344_v19 = vpop.f32.mrf.mxu2 }
  0xd6   :  { %v345_v2 = vadd.f32 %v344_v19, %v291_v45  ;;  %v4978_v45 = vld [vmem:[#allocation38_spill] sm:$0xff] }
  0xd7   :  { %v383_v51 = vpop.f32.mrf.mxu3 }
  0xd8   :  { %v384_v26 = vadd.f32 %v383_v51, %v345_v2  ;;  %v4975_v51 = vld [vmem:[#allocation36_spill] sm:$0xff] }
  0xda   :  { %v452_v24 = vpop.f32.mrf.mxu0 }
  0xdb   :  { %v453_v18 = vadd.f32 %v452_v24, %v384_v26  ;;  %v4976_v26 = vld [vmem:[#allocation32_spill] sm:$0xff] }
  0xdc   :  { %v489_v44 = vpop.f32.mrf.mxu1 }
  0xdd   :  { %v4227_v35 = vadd.f32 %v489_v44, %v453_v18  ;;  %v4974_v18 = vld [vmem:[#allocation23_spill] sm:$0xff]  ;;  %v4988_v44 = vld [vmem:[#allocation33_spill] sm:$0xff] }
  0xf1   :  { %v530_v49 = vpop.f32.mrf.mxu2  ;;  %v631_v53 = vpop.f32.mrf.mxu3 }
  0xf2   :  { %v632_v56 = vadd.f32 %v631_v53, %v530_v49  ;;  %v4986_v53 = vld [vmem:[#allocation29_spill] sm:$0xff]  ;;  %v4987_v49 = vld [vmem:[#allocation31_spill] sm:$0xff] }
  0xf4   :  { %v685_v52 = vpop.f32.mrf.mxu0 }
  0xf5   :  { %v686_v54 = vadd.f32 %v685_v52, %v632_v56  ;;  %v4980_v52 = vld [vmem:[#allocation25_spill] sm:$0xff]  ;;  %v4985_v56 = vld [vmem:[#allocation28_spill] sm:$0xff] }
  0xf8   :  { %v724_v38 = vpop.f32.mrf.mxu1 }
  0xf9   :  { %v725_v43 = vadd.f32 %v724_v38, %v686_v54  ;;  %v4979_v54 = vld [vmem:[#allocation34_spill] sm:$0xff]  ;;  %v4984_v38 = vld [vmem:[#allocation27_spill] sm:$0xff] }
  0xfa   :  { %v793_v8 = vpop.f32.mrf.mxu2 }
  0xfb   :  { %v794_v60 = vadd.f32 %v793_v8, %v725_v43  ;;  %v4973_v43 = vld [vmem:[#allocation30_spill] sm:$0xff]  ;;  %v4981_v8 = vld [vmem:[#allocation43_spill] sm:$0xff] }
  0xfc   :  { %v830_v14 = vpop.f32.mrf.mxu3 }
  0xfd   :  { %v831_v10 = vadd.f32 %v830_v14, %v794_v60  ;;  %v4983_v60 = vld [vmem:[#allocation26_spill] sm:$0xff] }
  0xff   :  { %v833_v59 = vadd.f32 %v831_v10, %v4227_v35  ;;  %v4982_v10 = vld [vmem:[#allocation40_spill] sm:$0xff] }
 0x101   :  { %3319 = vtanh.f32 %v833_v59 }
 0x107   :  { %v4230_v63 = vpop.eup %3319 }
 0x108   :  { %4972 = vst [vmem:[#allocation12_spill] sm:$0xff] %v4230_v63  ;;  %v867_v19 = vand.u32 4294901760, %v4230_v63 }
 0x10a   :  { %973 = vmatmul.f32.vlgmr.msrb.gmra.mxu1 %v867_v19  ;;  %v868_v2 = vsub.f32 %v4230_v63, %v867_v19  ;;  %v4994_v63 = vld [vmem:[#allocation10_spill] sm:$0xff] }
 0x10b   :  { %1381 = vmatpush.msrb.mxu1 %v3638_v9 }
 0x10c   :  { %1027 = vmatmul.f32.vlgmr.msrb.gmra.mxu2 %v868_v2  ;;  %v869_v24 = vand.u32 4294901760, %v868_v2 }
 0x10d   :  { %1383 = vmatpush.msrb.mxu1 %v3655_v62  ;;  %1422 = vmatpush.msrb.mxu2 %v4957_v39 }
 0x10e   :  { %1066 = vmatmul.f32.vlgmr.msrb.gmra.mxu3 %v869_v24  ;;  %v870_v14 = vsub.f32 %v868_v2, %v869_v24  ;;  %v4990_v2 = vld [vmem:[#allocation37_spill] sm:$0xff]  ;;  %v4991_v24 = vld [vmem:[#allocation39_spill] sm:$0xff] }
 0x10f   :  { %1385 = vmatpush.msrb.mxu1 %v3676_v48  ;;  %1489 = vmatpush.msrb.mxu3 %v3638_v9 }
 0x110   :  { %v871_v59 = vand.u32 4294901760, %v870_v14  ;;  %1426 = vmatpush.msrb.mxu2 %v4960_v57  ;;  %v4992_v14 = vld [vmem:[#allocation41_spill] sm:$0xff] }
 0x111   :  { %1387 = vmatpush.msrb.mxu1 %v3694_v12  ;;  %1491 = vmatpush.msrb.mxu3 %v3655_v62 }
 0x112   :  { %872 = vmatmul.f32.vlgmr.msrb.gmra.mxu0 %v871_v59  ;;  %1172 = vmatmul.f32.vlgmr.msra.gmra.mxu1 %v867_v19  ;;  %v4993_v59 = vld [vmem:[#allocation42_spill] sm:$0xff] }
 0x113   :  { %1328 = vmatpush.msrb.mxu0 %v4956_v61  ;;  %1389 = vmatpush.msrb.mxu1 %v3715_v46 }
 0x114   :  { %1493 = vmatpush.msrb.mxu3 %v3676_v48  ;;  %1430 = vmatpush.msrb.mxu2 %v4963_v16 }
 0x115   :  { %1331 = vmatpush.msrb.mxu0 %v4959_v47  ;;  %1391 = vmatpush.msrb.mxu1 %v3721_v3 }
 0x116   :  { %1495 = vmatpush.msrb.mxu3 %v3694_v12  ;;  %1434 = vmatpush.msrb.mxu2 %v4964_v36 }
 0x117   :  { %1334 = vmatpush.msrb.mxu0 %v4962_v7  ;;  %1393 = vmatpush.msrb.mxu1 %v3741_v15 }
 0x118   :  { %1497 = vmatpush.msrb.mxu3 %v3715_v46  ;;  %1438 = vmatpush.msrb.mxu2 %v3786_v0 }
 0x119   :  { %1337 = vmatpush.msrb.mxu0 %v3732_v11  ;;  %1395 = vmatpush.msrb.mxu1 %v3769_v50 }
 0x11a   :  { %1135 = vmatmul.f32.vlgmr.msra.gmra.mxu0 %v867_v19  ;;  %1499 = vmatpush.msrb.mxu3 %v3721_v3  ;;  %v4989_v19 = vld [vmem:[#allocation35_spill] sm:$0xff] }
 0x11b   :  { %1340 = vmatpush.msrb.mxu0 %v3751_v55  ;;  %1397 = vmatpush.msrb.mxu1 %v3789_v13 }
 0x11c   :  { %1501 = vmatpush.msrb.mxu3 %v3741_v15  ;;  %1442 = vmatpush.msrb.mxu2 %v3794_v25 }
 0x11d   :  { %1343 = vmatpush.msrb.mxu0 %v3760_v30  ;;  %1399 = vmatpush.msrb.mxu1 %v3806_v32 }
 0x11e   :  { %1503 = vmatpush.msrb.mxu3 %v3769_v50  ;;  %1446 = vmatpush.msrb.mxu2 %v3812_v6 }
 0x11f   :  { %1346 = vmatpush.msrb.mxu0 %v3778_v29  ;;  %1401 = vmatpush.msrb.mxu1 %v3824_v40 }
 0x120   :  { %1505 = vmatpush.msrb.mxu3 %v3789_v13  ;;  %1450 = vmatpush.msrb.mxu2 %v3835_v1 }
 0x121   :  { %1349 = vmatpush.msrb.mxu0 %v3803_v58  ;;  %1403 = vmatpush.msrb.mxu1 %v3842_v41 }
 0x122   :  { %1507 = vmatpush.msrb.mxu3 %v3806_v32  ;;  %1454 = vmatpush.msrb.mxu2 %v3853_v5 }
 0x123   :  { %1352 = vmatpush.msrb.mxu0 %v3821_v4  ;;  %1405 = vmatpush.msrb.mxu1 %v3860_v42 }
 0x124   :  { %1509 = vmatpush.msrb.mxu3 %v3824_v40  ;;  %1458 = vmatpush.msrb.mxu2 %v3872_v21 }
 0x125   :  { %1355 = vmatpush.msrb.mxu0 %v3839_v23  ;;  %1407 = vmatpush.msrb.mxu1 %v3879_v33 }
 0x126   :  { %1511 = vmatpush.msrb.mxu3 %v3842_v41  ;;  %1462 = vmatpush.msrb.mxu2 %v3891_v20 }
 0x127   :  { %1358 = vmatpush.msrb.mxu0 %v3857_v22  ;;  %1409 = vmatpush.msrb.mxu1 %v3898_v34 }
 0x128   :  { %1513 = vmatpush.msrb.mxu3 %v3860_v42  ;;  %1466 = vmatpush.msrb.mxu2 %v3913_v28 }
 0x129   :  { %1361 = vmatpush.msrb.mxu0 %v3876_v27  ;;  %1411 = vmatpush.msrb.mxu1 %v3950_v17 }
 0x12a   :  { %1515 = vmatpush.msrb.mxu3 %v3879_v33  ;;  %1470 = vmatpush.msrb.mxu2 %v3931_v31 }
 0x12b   :  { %1364 = vmatpush.msrb.mxu0 %v4973_v43  ;;  %1579 = vmatpush.msra.mxu1 %v4974_v18 }
 0x12c   :  { %1517 = vmatpush.msrb.mxu3 %v3898_v34  ;;  %1474 = vmatpush.msrb.mxu2 %v4975_v51 }
 0x12d   :  { %1367 = vmatpush.msrb.mxu0 %v4976_v26  ;;  %1585 = vmatpush.msra.mxu1 %v4977_v37 }
 0x12e   :  { %1519 = vmatpush.msrb.mxu3 %v3950_v17  ;;  %1478 = vmatpush.msrb.mxu2 %v4978_v45 }
 0x12f   :  { %1370 = vmatpush.msrb.mxu0 %v4979_v54  ;;  %1591 = vmatpush.msra.mxu1 %v4980_v52 }
 0x130   :  { %1482 = vmatpush.msrb.mxu2 %v4981_v8 }
 0x131   :  { %1373 = vmatpush.msrb.mxu0 %v4982_v10  ;;  %1597 = vmatpush.msra.mxu1 %v4983_v60 }
 0x133   :  { %1534 = vmatpush.msra.mxu0 %v3638_v9  ;;  %1603 = vmatpush.msra.mxu1 %v4984_v38 }
 0x135   :  { %1536 = vmatpush.msra.mxu0 %v3655_v62  ;;  %1609 = vmatpush.msra.mxu1 %v4985_v56 }
 0x137   :  { %1538 = vmatpush.msra.mxu0 %v3676_v48  ;;  %1615 = vmatpush.msra.mxu1 %v4986_v53 }
 0x139   :  { %1540 = vmatpush.msra.mxu0 %v3694_v12  ;;  %1621 = vmatpush.msra.mxu1 %v4987_v49 }
 0x13b   :  { %1542 = vmatpush.msra.mxu0 %v3715_v46  ;;  %1627 = vmatpush.msra.mxu1 %v4988_v44 }
 0x13d   :  { %1544 = vmatpush.msra.mxu0 %v3721_v3  ;;  %1633 = vmatpush.msra.mxu1 %v4989_v19  ;;  %v4995_v19 = vld [vmem:[#allocation11_spill] sm:$0xff] }
 0x13f   :  { %1546 = vmatpush.msra.mxu0 %v3741_v15  ;;  %1639 = vmatpush.msra.mxu1 %v4990_v2 }
 0x141   :  { %1548 = vmatpush.msra.mxu0 %v3769_v50  ;;  %1645 = vmatpush.msra.mxu1 %v4991_v24 }
 0x143   :  { %1550 = vmatpush.msra.mxu0 %v3789_v13  ;;  %1651 = vmatpush.msra.mxu1 %v4992_v14 }
 0x145   :  { %1552 = vmatpush.msra.mxu0 %v3806_v32  ;;  %1657 = vmatpush.msra.mxu1 %v4993_v59 }
 0x147   :  { %1554 = vmatpush.msra.mxu0 %v3824_v40  ;;  %1663 = vmatpush.msra.mxu1 %v4994_v63 }
 0x149   :  { %1556 = vmatpush.msra.mxu0 %v3842_v41  ;;  %1669 = vmatpush.msra.mxu1 %v4995_v19 }
 0x14b   :  { %1558 = vmatpush.msra.mxu0 %v3860_v42 }
 0x14d   :  { %1560 = vmatpush.msra.mxu0 %v3879_v33 }
 0x14f   :  { %1562 = vmatpush.msra.mxu0 %v3898_v34 }
 0x151   :  { %1564 = vmatpush.msra.mxu0 %v3950_v17 }
 0x187   :  { %v974_v14 = vpop.f32.mrf.mxu1 }
 0x18f   :  { %v873_v24 = vpop.f32.mrf.mxu0  ;;  %v1028_v59 = vpop.f32.mrf.mxu2 }
 0x190   :  { %v975_v2 = vadd.f32 %v974_v14, %v873_v24  ;;  %v1173_v38 = vpop.f32.mrf.mxu1  ;;  %v5006_v24 = vld [vmem:[#allocation33_spill] sm:$0xff]  ;;  %v5007_v14 = vld [vmem:[#allocation35_spill] sm:$0xff] }
 0x191   :  { %v1067_v49 = vpop.f32.mrf.mxu3 }
 0x192   :  { %v1029_v44 = vadd.f32 %v1028_v59, %v975_v2  ;;  %v5008_v59 = vld [vmem:[#allocation37_spill] sm:$0xff] }
 0x194   :  { %v1068_v53 = vadd.f32 %v1067_v49, %v1029_v44  ;;  %v5003_v49 = vld [vmem:[#allocation28_spill] sm:$0xff]  ;;  %v5004_v44 = vld [vmem:[#allocation29_spill] sm:$0xff] }
 0x197   :  { %v1136_v63 = vpop.f32.mrf.mxu0 }
 0x198   :  { %v1137_v56 = vadd.f32 %v1136_v63, %v1068_v53  ;;  %v5002_v53 = vld [vmem:[#allocation27_spill] sm:$0xff] }
 0x19a   :  { %v1174_v60 = vadd.f32 %v1173_v38, %v1137_v56  ;;  %v5000_v38 = vld [vmem:[#allocation40_spill] sm:$0xff]  ;;  %v5001_v56 = vld [vmem:[#allocation26_spill] sm:$0xff] }
 0x19c   :  { %v1177_v19 = vrot.slane %v1174_v60, 7  ;;  %v4999_v60 = vld [vmem:[#allocation43_spill] sm:$0xff] }
 0x19e   :  { %v1179_v10 = vadd.f32 %v1177_v19, %v4227_v35  ;;  %v5005_v19 = vld [vmem:[#allocation31_spill] sm:$0xff] }
 0x1a0   :  { %3321 = vtanh.f32 %v1179_v10 }
 0x1a6   :  { %v4331_v8 = vpop.eup %3321 }
 0x1a7   :  { %v1182_v52 = vrot.slane %v4331_v8, 1 }
 0x1a9   :  { %v1216_v54 = vand.u32 4294901760, %v1182_v52 }
 0x1ab   :  { %1322 = vmatmul.f32.vlgmr.msra.gmra.mxu3 %v1216_v54  ;;  %v1217_v45 = vsub.f32 %v1182_v52, %v1216_v54  ;;  %v4998_v52 = vld [vmem:[#allocation25_spill] sm:$0xff] }
 0x1ac   :  { %1730 = vmatpush.msra.mxu3 %v3638_v9 }
 0x1ad   :  { %1376 = vmatmul.f32.vlgmr.msrb.gmra.mxu0 %v1217_v45  ;;  %v1218_v2 = vand.u32 4294901760, %v1217_v45 }
 0x1ae   :  { %1732 = vmatpush.msra.mxu3 %v3655_v62  ;;  %1771 = vmatpush.msrb.mxu0 %v4957_v39 }
 0x1af   :  { %1415 = vmatmul.f32.vlgmr.msrb.gmra.mxu1 %v1218_v2  ;;  %v1219_v63 = vsub.f32 %v1217_v45, %v1218_v2  ;;  %v4996_v45 = vld [vmem:[#allocation38_spill] sm:$0xff]  ;;  %v5009_v2 = vld [vmem:[#allocation39_spill] sm:$0xff] }
 0x1b0   :  { %1734 = vmatpush.msra.mxu3 %v3676_v48  ;;  %1838 = vmatpush.msrb.mxu1 %v3638_v9 }
 0x1b1   :  { %v1220_v10 = vand.u32 4294901760, %v1219_v63  ;;  %1775 = vmatpush.msrb.mxu0 %v4960_v57  ;;  %v5010_v63 = vld [vmem:[#allocation41_spill] sm:$0xff] }
 0x1b2   :  { %1736 = vmatpush.msra.mxu3 %v3694_v12  ;;  %1840 = vmatpush.msrb.mxu1 %v3655_v62 }
 0x1b3   :  { %1221 = vmatmul.f32.vlgmr.msra.gmra.mxu2 %v1220_v10  ;;  %1521 = vmatmul.f32.vlgmr.msrb.gmra.mxu3 %v1216_v54  ;;  %v5011_v10 = vld [vmem:[#allocation42_spill] sm:$0xff] }
 0x1b4   :  { %1677 = vmatpush.msra.mxu2 %v4956_v61  ;;  %1738 = vmatpush.msra.mxu3 %v3715_v46 }
 0x1b5   :  { %1842 = vmatpush.msrb.mxu1 %v3676_v48  ;;  %1779 = vmatpush.msrb.mxu0 %v4963_v16 }
 0x1b6   :  { %1680 = vmatpush.msra.mxu2 %v4959_v47  ;;  %1740 = vmatpush.msra.mxu3 %v3721_v3 }
 0x1b7   :  { %1844 = vmatpush.msrb.mxu1 %v3694_v12  ;;  %1783 = vmatpush.msrb.mxu0 %v4964_v36 }
 0x1b8   :  { %1683 = vmatpush.msra.mxu2 %v4962_v7  ;;  %1742 = vmatpush.msra.mxu3 %v3741_v15 }
 0x1b9   :  { %1846 = vmatpush.msrb.mxu1 %v3715_v46  ;;  %1787 = vmatpush.msrb.mxu0 %v3786_v0 }
 0x1ba   :  { %1686 = vmatpush.msra.mxu2 %v3732_v11  ;;  %1744 = vmatpush.msra.mxu3 %v3769_v50 }
 0x1bb   :  { %1484 = vmatmul.f32.vlgmr.msrb.gmra.mxu2 %v1216_v54  ;;  %1848 = vmatpush.msrb.mxu1 %v3721_v3  ;;  %v4997_v54 = vld [vmem:[#allocation34_spill] sm:$0xff] }
 0x1bc   :  { %1689 = vmatpush.msra.mxu2 %v3751_v55  ;;  %1746 = vmatpush.msra.mxu3 %v3789_v13 }
 0x1bd   :  { %1850 = vmatpush.msrb.mxu1 %v3741_v15  ;;  %1791 = vmatpush.msrb.mxu0 %v3794_v25 }
 0x1be   :  { %1692 = vmatpush.msra.mxu2 %v3760_v30  ;;  %1748 = vmatpush.msra.mxu3 %v3806_v32 }
 0x1bf   :  { %1852 = vmatpush.msrb.mxu1 %v3769_v50  ;;  %1795 = vmatpush.msrb.mxu0 %v3812_v6 }
 0x1c0   :  { %1695 = vmatpush.msra.mxu2 %v3778_v29  ;;  %1750 = vmatpush.msra.mxu3 %v3824_v40 }
 0x1c1   :  { %1854 = vmatpush.msrb.mxu1 %v3789_v13  ;;  %1799 = vmatpush.msrb.mxu0 %v3835_v1 }
 0x1c2   :  { %1698 = vmatpush.msra.mxu2 %v3803_v58  ;;  %1752 = vmatpush.msra.mxu3 %v3842_v41 }
 0x1c3   :  { %1856 = vmatpush.msrb.mxu1 %v3806_v32  ;;  %1803 = vmatpush.msrb.mxu0 %v3853_v5 }
 0x1c4   :  { %1701 = vmatpush.msra.mxu2 %v3821_v4  ;;  %1754 = vmatpush.msra.mxu3 %v3860_v42 }
 0x1c5   :  { %1858 = vmatpush.msrb.mxu1 %v3824_v40  ;;  %1807 = vmatpush.msrb.mxu0 %v3872_v21 }
 0x1c6   :  { %1704 = vmatpush.msra.mxu2 %v3839_v23  ;;  %1756 = vmatpush.msra.mxu3 %v3879_v33 }
 0x1c7   :  { %1860 = vmatpush.msrb.mxu1 %v3842_v41  ;;  %1811 = vmatpush.msrb.mxu0 %v3891_v20 }
 0x1c8   :  { %1707 = vmatpush.msra.mxu2 %v3857_v22  ;;  %1758 = vmatpush.msra.mxu3 %v3898_v34 }
 0x1c9   :  { %1862 = vmatpush.msrb.mxu1 %v3860_v42  ;;  %1815 = vmatpush.msrb.mxu0 %v3913_v28 }
 0x1ca   :  { %1710 = vmatpush.msra.mxu2 %v3876_v27  ;;  %1760 = vmatpush.msra.mxu3 %v3950_v17 }
 0x1cb   :  { %1864 = vmatpush.msrb.mxu1 %v3879_v33  ;;  %1819 = vmatpush.msrb.mxu0 %v3931_v31 }
 0x1cc   :  { %1713 = vmatpush.msra.mxu2 %v4973_v43  ;;  %1928 = vmatpush.msrb.mxu3 %v4974_v18 }
 0x1cd   :  { %1866 = vmatpush.msrb.mxu1 %v3898_v34  ;;  %1823 = vmatpush.msrb.mxu0 %v4975_v51 }
 0x1ce   :  { %1716 = vmatpush.msra.mxu2 %v4976_v26  ;;  %1934 = vmatpush.msrb.mxu3 %v4977_v37 }
 0x1cf   :  { %1868 = vmatpush.msrb.mxu1 %v3950_v17  ;;  %1827 = vmatpush.msrb.mxu0 %v4996_v45 }
 0x1d0   :  { %1719 = vmatpush.msra.mxu2 %v4997_v54  ;;  %1940 = vmatpush.msrb.mxu3 %v4998_v52  ;;  %v5014_v54 = vld [vmem:[#allocation12_spill] sm:$0xff] }
 0x1d1   :  { %1831 = vmatpush.msrb.mxu0 %v4999_v60  ;;  %v3276_v45 = vsel %vm3275_vm0, %v5014_v54, %v4331_v8  ;;  %v5016_v54 = vld [vmem:[#allocation38_spill] sm:$0xff] }
 0x1d2   :  { %1722 = vmatpush.msra.mxu2 %v5000_v38  ;;  %1946 = vmatpush.msrb.mxu3 %v5001_v56 }
 0x1d4   :  { %1883 = vmatpush.msrb.mxu2 %v3638_v9  ;;  %1952 = vmatpush.msrb.mxu3 %v5002_v53 }
 0x1d6   :  { %1885 = vmatpush.msrb.mxu2 %v3655_v62  ;;  %1958 = vmatpush.msrb.mxu3 %v5003_v49 }
 0x1d8   :  { %1887 = vmatpush.msrb.mxu2 %v3676_v48  ;;  %1964 = vmatpush.msrb.mxu3 %v5004_v44 }
 0x1da   :  { %1889 = vmatpush.msrb.mxu2 %v3694_v12  ;;  %1970 = vmatpush.msrb.mxu3 %v5005_v19 }
 0x1dc   :  { %1891 = vmatpush.msrb.mxu2 %v3715_v46  ;;  %1976 = vmatpush.msrb.mxu3 %v5006_v24  ;;  %v5012_v24 = vld [vmem:[#allocation10_spill] sm:$0xff] }
 0x1de   :  { %1893 = vmatpush.msrb.mxu2 %v3721_v3  ;;  %1982 = vmatpush.msrb.mxu3 %v5007_v14  ;;  %v5013_v14 = vld [vmem:[#allocation11_spill] sm:$0xff] }
 0x1e0   :  { %1895 = vmatpush.msrb.mxu2 %v3741_v15  ;;  %1988 = vmatpush.msrb.mxu3 %v5008_v59 }
 0x1e2   :  { %1897 = vmatpush.msrb.mxu2 %v3769_v50  ;;  %1994 = vmatpush.msrb.mxu3 %v5009_v2 }
 0x1e4   :  { %1899 = vmatpush.msrb.mxu2 %v3789_v13  ;;  %2000 = vmatpush.msrb.mxu3 %v5010_v63 }
 0x1e6   :  { %1901 = vmatpush.msrb.mxu2 %v3806_v32  ;;  %2006 = vmatpush.msrb.mxu3 %v5011_v10 }
 0x1e8   :  { %1903 = vmatpush.msrb.mxu2 %v3824_v40  ;;  %2012 = vmatpush.msrb.mxu3 %v5012_v24 }
 0x1ea   :  { %1905 = vmatpush.msrb.mxu2 %v3842_v41  ;;  %2018 = vmatpush.msrb.mxu3 %v5013_v14 }
 0x1ec   :  { %1907 = vmatpush.msrb.mxu2 %v3860_v42 }
 0x1ee   :  { %1909 = vmatpush.msrb.mxu2 %v3879_v33 }
 0x1f0   :  { %1911 = vmatpush.msrb.mxu2 %v3898_v34 }
 0x1f2   :  { %1913 = vmatpush.msrb.mxu2 %v3950_v17 }
 0x22a   :  { %v1377_v10 = vpop.f32.mrf.mxu0 }
 0x22c   :  { %v1416_v44 = vpop.f32.mrf.mxu1 }
 0x22e   :  { %v1323_v63 = vpop.f32.mrf.mxu3 }
 0x236   :  { %v1222_v2 = vpop.f32.mrf.mxu2  ;;  %v1522_v56 = vpop.f32.mrf.mxu3 }
 0x237   :  { %v1324_v59 = vadd.f32 %v1323_v63, %v1222_v2  ;;  %v5024_v63 = vld [vmem:[#allocation29_spill] sm:$0xff] }
 0x239   :  { %v1378_v19 = vadd.f32 %v1377_v10, %v1324_v59  ;;  %v5025_v10 = vld [vmem:[#allocation31_spill] sm:$0xff] }
 0x23b   :  { %v1417_v49 = vadd.f32 %v1416_v44, %v1378_v19  ;;  %v5021_v19 = vld [vmem:[#allocation26_spill] sm:$0xff] }
 0x23e   :  { %v1485_v24 = vpop.f32.mrf.mxu2 }
 0x23f   :  { %v1486_v53 = vadd.f32 %v1485_v24, %v1417_v49  ;;  %v5020_v49 = vld [vmem:[#allocation40_spill] sm:$0xff]  ;;  %v5022_v24 = vld [vmem:[#allocation27_spill] sm:$0xff] }
 0x241   :  { %v1523_v38 = vadd.f32 %v1522_v56, %v1486_v53  ;;  %v5019_v53 = vld [vmem:[#allocation43_spill] sm:$0xff] }
 0x243   :  { %v1526_v14 = vrot.slane %v1523_v38, 6  ;;  %v5018_v38 = vld [vmem:[#allocation25_spill] sm:$0xff] }
 0x245   :  { %v1528_v60 = vadd.f32 %v1526_v14, %v4227_v35  ;;  %v5023_v14 = vld [vmem:[#allocation28_spill] sm:$0xff] }
 0x247   :  { %3323 = vtanh.f32 %v1528_v60 }
 0x24d   :  { %v3324_v52 = vpop.eup %3323 }
 0x24e   :  { %v4433_v37 = vsel %vm3277_vm1, %v3276_v45, %v3324_v52  ;;  %v1531_v2 = vrot.slane %v3324_v52, 2  ;;  %v5015_v45 = vld [vmem:[#allocation24_spill] sm:$0xff]  ;;  %v5017_v52 = vld [vmem:[#allocation34_spill] sm:$0xff] }
 0x250   :  { %v1565_v59 = vand.u32 4294901760, %v1531_v2 }
 0x252   :  { %1671 = vmatmul.f32.vlgmr.msra.gmra.mxu1 %v1565_v59  ;;  %v1566_v44 = vsub.f32 %v1531_v2, %v1565_v59  ;;  %v5026_v2 = vld [vmem:[#allocation33_spill] sm:$0xff] }
 0x253   :  { %2079 = vmatpush.msra.mxu1 %v3638_v9 }
 0x254   :  { %1725 = vmatmul.f32.vlgmr.msra.gmra.mxu2 %v1566_v44  ;;  %v1567_v56 = vand.u32 4294901760, %v1566_v44 }
 0x255   :  { %2081 = vmatpush.msra.mxu1 %v3655_v62  ;;  %2120 = vmatpush.msra.mxu2 %v4957_v39 }
 0x256   :  { %1764 = vmatmul.f32.vlgmr.msra.gmra.mxu3 %v1567_v56  ;;  %v1568_v60 = vsub.f32 %v1566_v44, %v1567_v56  ;;  %v5028_v44 = vld [vmem:[#allocation37_spill] sm:$0xff]  ;;  %v5029_v56 = vld [vmem:[#allocation39_spill] sm:$0xff] }
 0x257   :  { %2083 = vmatpush.msra.mxu1 %v3676_v48  ;;  %2187 = vmatpush.msra.mxu3 %v3638_v9 }
 0x258   :  { %v1569_v8 = vand.u32 4294901760, %v1568_v60  ;;  %2124 = vmatpush.msra.mxu2 %v4960_v57  ;;  %v5030_v60 = vld [vmem:[#allocation41_spill] sm:$0xff] }
 0x259   :  { %2085 = vmatpush.msra.mxu1 %v3694_v12  ;;  %2189 = vmatpush.msra.mxu3 %v3655_v62 }
 0x25a   :  { %1570 = vmatmul.f32.vlgmr.msra.gmra.mxu0 %v1569_v8  ;;  %1870 = vmatmul.f32.vlgmr.msrb.gmra.mxu1 %v1565_v59  ;;  %v5031_v8 = vld [vmem:[#allocation42_spill] sm:$0xff] }
 0x25b   :  { %2026 = vmatpush.msra.mxu0 %v4956_v61  ;;  %2087 = vmatpush.msra.mxu1 %v3715_v46 }
 0x25c   :  { %2191 = vmatpush.msra.mxu3 %v3676_v48  ;;  %2128 = vmatpush.msra.mxu2 %v4963_v16 }
 0x25d   :  { %2029 = vmatpush.msra.mxu0 %v4959_v47  ;;  %2089 = vmatpush.msra.mxu1 %v3721_v3 }
 0x25e   :  { %2193 = vmatpush.msra.mxu3 %v3694_v12  ;;  %2132 = vmatpush.msra.mxu2 %v4964_v36 }
 0x25f   :  { %2032 = vmatpush.msra.mxu0 %v4962_v7  ;;  %2091 = vmatpush.msra.mxu1 %v3741_v15 }
 0x260   :  { %2195 = vmatpush.msra.mxu3 %v3715_v46  ;;  %2136 = vmatpush.msra.mxu2 %v3786_v0 }
 0x261   :  { %2035 = vmatpush.msra.mxu0 %v3732_v11  ;;  %2093 = vmatpush.msra.mxu1 %v3769_v50 }
 0x262   :  { %1833 = vmatmul.f32.vlgmr.msrb.gmra.mxu0 %v1565_v59  ;;  %2197 = vmatpush.msra.mxu3 %v3721_v3  ;;  %v5027_v59 = vld [vmem:[#allocation35_spill] sm:$0xff] }
 0x263   :  { %2038 = vmatpush.msra.mxu0 %v3751_v55  ;;  %2095 = vmatpush.msra.mxu1 %v3789_v13 }
 0x264   :  { %2199 = vmatpush.msra.mxu3 %v3741_v15  ;;  %2140 = vmatpush.msra.mxu2 %v3794_v25 }
 0x265   :  { %2041 = vmatpush.msra.mxu0 %v3760_v30  ;;  %2097 = vmatpush.msra.mxu1 %v3806_v32 }
 0x266   :  { %2201 = vmatpush.msra.mxu3 %v3769_v50  ;;  %2144 = vmatpush.msra.mxu2 %v3812_v6 }
 0x267   :  { %2044 = vmatpush.msra.mxu0 %v3778_v29  ;;  %2099 = vmatpush.msra.mxu1 %v3824_v40 }
 0x268   :  { %2203 = vmatpush.msra.mxu3 %v3789_v13  ;;  %2148 = vmatpush.msra.mxu2 %v3835_v1 }
 0x269   :  { %2047 = vmatpush.msra.mxu0 %v3803_v58  ;;  %2101 = vmatpush.msra.mxu1 %v3842_v41 }
 0x26a   :  { %2205 = vmatpush.msra.mxu3 %v3806_v32  ;;  %2152 = vmatpush.msra.mxu2 %v3853_v5 }
 0x26b   :  { %2050 = vmatpush.msra.mxu0 %v3821_v4  ;;  %2103 = vmatpush.msra.mxu1 %v3860_v42 }
 0x26c   :  { %2207 = vmatpush.msra.mxu3 %v3824_v40  ;;  %2156 = vmatpush.msra.mxu2 %v3872_v21 }
 0x26d   :  { %2053 = vmatpush.msra.mxu0 %v3839_v23  ;;  %2105 = vmatpush.msra.mxu1 %v3879_v33 }
 0x26e   :  { %2209 = vmatpush.msra.mxu3 %v3842_v41  ;;  %2160 = vmatpush.msra.mxu2 %v3891_v20 }
 0x26f   :  { %2056 = vmatpush.msra.mxu0 %v3857_v22  ;;  %2107 = vmatpush.msra.mxu1 %v3898_v34 }
 0x270   :  { %2211 = vmatpush.msra.mxu3 %v3860_v42  ;;  %2164 = vmatpush.msra.mxu2 %v3913_v28 }
 0x271   :  { %2059 = vmatpush.msra.mxu0 %v3876_v27  ;;  %2109 = vmatpush.msra.mxu1 %v3950_v17 }
 0x272   :  { %2213 = vmatpush.msra.mxu3 %v3879_v33  ;;  %2168 = vmatpush.msra.mxu2 %v3931_v31 }
 0x273   :  { %2062 = vmatpush.msra.mxu0 %v4973_v43  ;;  %2277 = vmatpush.msrb.mxu1 %v4974_v18 }
 0x274   :  { %2215 = vmatpush.msra.mxu3 %v3898_v34  ;;  %2172 = vmatpush.msra.mxu2 %v4975_v51 }
 0x275   :  { %2065 = vmatpush.msra.mxu0 %v4976_v26  ;;  %2283 = vmatpush.msrb.mxu1 %v5015_v45 }
 0x276   :  { %2217 = vmatpush.msra.mxu3 %v3950_v17  ;;  %2176 = vmatpush.msra.mxu2 %v5016_v54 }
 0x277   :  { %2068 = vmatpush.msra.mxu0 %v5017_v52  ;;  %2289 = vmatpush.msrb.mxu1 %v5018_v38 }
 0x278   :  { %2180 = vmatpush.msra.mxu2 %v5019_v53 }
 0x279   :  { %2071 = vmatpush.msra.mxu0 %v5020_v49  ;;  %2295 = vmatpush.msrb.mxu1 %v5021_v19 }
 0x27b   :  { %2232 = vmatpush.msrb.mxu0 %v3638_v9  ;;  %2301 = vmatpush.msrb.mxu1 %v5022_v24 }
 0x27d   :  { %2234 = vmatpush.msrb.mxu0 %v3655_v62  ;;  %2307 = vmatpush.msrb.mxu1 %v5023_v14 }
 0x27f   :  { %2236 = vmatpush.msrb.mxu0 %v3676_v48  ;;  %2313 = vmatpush.msrb.mxu1 %v5024_v63 }
 0x281   :  { %2238 = vmatpush.msrb.mxu0 %v3694_v12  ;;  %2319 = vmatpush.msrb.mxu1 %v5025_v10 }
 0x283   :  { %2240 = vmatpush.msrb.mxu0 %v3715_v46  ;;  %2325 = vmatpush.msrb.mxu1 %v5026_v2  ;;  %v5032_v2 = vld [vmem:[#allocation10_spill] sm:$0xff] }
 0x285   :  { %2242 = vmatpush.msrb.mxu0 %v3721_v3  ;;  %2331 = vmatpush.msrb.mxu1 %v5027_v59  ;;  %v5033_v59 = vld [vmem:[#allocation11_spill] sm:$0xff] }
 0x287   :  { %2244 = vmatpush.msrb.mxu0 %v3741_v15  ;;  %2337 = vmatpush.msrb.mxu1 %v5028_v44 }
 0x289   :  { %2246 = vmatpush.msrb.mxu0 %v3769_v50  ;;  %2343 = vmatpush.msrb.mxu1 %v5029_v56 }
 0x28b   :  { %2248 = vmatpush.msrb.mxu0 %v3789_v13  ;;  %2349 = vmatpush.msrb.mxu1 %v5030_v60 }
 0x28d   :  { %2250 = vmatpush.msrb.mxu0 %v3806_v32  ;;  %2355 = vmatpush.msrb.mxu1 %v5031_v8 }
 0x28f   :  { %2252 = vmatpush.msrb.mxu0 %v3824_v40  ;;  %2361 = vmatpush.msrb.mxu1 %v5032_v2 }
 0x291   :  { %2254 = vmatpush.msrb.mxu0 %v3842_v41  ;;  %2367 = vmatpush.msrb.mxu1 %v5033_v59 }
 0x293   :  { %2256 = vmatpush.msrb.mxu0 %v3860_v42 }
 0x295   :  { %2258 = vmatpush.msrb.mxu0 %v3879_v33 }
 0x297   :  { %2260 = vmatpush.msrb.mxu0 %v3898_v34 }
 0x299   :  { %2262 = vmatpush.msrb.mxu0 %v3950_v17 }
 0x2cf   :  { %v1672_v60 = vpop.f32.mrf.mxu1 }
 0x2d7   :  { %v1571_v56 = vpop.f32.mrf.mxu0  ;;  %v1726_v8 = vpop.f32.mrf.mxu2 }
 0x2d8   :  { %v1673_v44 = vadd.f32 %v1672_v60, %v1571_v56  ;;  %v1871_v19 = vpop.f32.mrf.mxu1  ;;  %v5045_v60 = vld [vmem:[#allocation33_spill] sm:$0xff] }
 0x2d9   :  { %v1765_v63 = vpop.f32.mrf.mxu3 }
 0x2da   :  { %v1727_v10 = vadd.f32 %v1726_v8, %v1673_v44  ;;  %v5044_v44 = vld [vmem:[#allocation31_spill] sm:$0xff] }
 0x2db   :  { %v5046_v8 = vld [vmem:[#allocation35_spill] sm:$0xff] }
 0x2dc   :  { %v1766_v14 = vadd.f32 %v1765_v63, %v1727_v10  ;;  %v5041_v10 = vld [vmem:[#allocation27_spill] sm:$0xff] }
 0x2df   :  { %v1834_v2 = vpop.f32.mrf.mxu0 }
 0x2e0   :  { %v1835_v24 = vadd.f32 %v1834_v2, %v1766_v14  ;;  %v5040_v14 = vld [vmem:[#allocation26_spill] sm:$0xff]  ;;  %v5042_v2 = vld [vmem:[#allocation28_spill] sm:$0xff] }
 0x2e2   :  { %v1872_v49 = vadd.f32 %v1871_v19, %v1835_v24  ;;  %v5038_v19 = vld [vmem:[#allocation43_spill] sm:$0xff]  ;;  %v5039_v24 = vld [vmem:[#allocation40_spill] sm:$0xff] }
 0x2e4   :  { %v1875_v59 = vrot.slane %v1872_v49, 5 }
 0x2e6   :  { %v1877_v53 = vadd.f32 %v1875_v59, %v4227_v35  ;;  %v5043_v59 = vld [vmem:[#allocation29_spill] sm:$0xff] }
 0x2e8   :  { %3325 = vtanh.f32 %v1877_v53  ;;  %v5037_v53 = vld [vmem:[#allocation25_spill] sm:$0xff] }
 0x2ee   :  { %v3326_v38 = vpop.eup %3325 }
 0x2ef   :  { %v4533_v52 = vsel %vm3279_vm2, %v4433_v37, %v3326_v38  ;;  %v1880_v54 = vrot.slane %v3326_v38, 3  ;;  %v5036_v38 = vld [vmem:[#allocation34_spill] sm:$0xff] }
 0x2f1   :  { %v1914_v45 = vand.u32 4294901760, %v1880_v54 }
 0x2f3   :  { %2020 = vmatmul.f32.vlgmr.msrb.gmra.mxu3 %v1914_v45  ;;  %v1915_v56 = vsub.f32 %v1880_v54, %v1914_v45  ;;  %v5035_v54 = vld [vmem:[#allocation38_spill] sm:$0xff] }
 0x2f4   :  { %2428 = vmatpush.msrb.mxu3 %v3638_v9 }
 0x2f5   :  { %2074 = vmatmul.f32.vlgmr.msra.gmra.mxu0 %v1915_v56  ;;  %v1916_v63 = vand.u32 4294901760, %v1915_v56 }
 0x2f6   :  { %2430 = vmatpush.msrb.mxu3 %v3655_v62  ;;  %2469 = vmatpush.msra.mxu0 %v4957_v39 }
 0x2f7   :  { %2113 = vmatmul.f32.vlgmr.msra.gmra.mxu1 %v1916_v63  ;;  %v1917_v49 = vsub.f32 %v1915_v56, %v1916_v63  ;;  %v5047_v56 = vld [vmem:[#allocation37_spill] sm:$0xff]  ;;  %v5048_v63 = vld [vmem:[#allocation39_spill] sm:$0xff] }
 0x2f8   :  { %2432 = vmatpush.msrb.mxu3 %v3676_v48  ;;  %2536 = vmatpush.msra.mxu1 %v3638_v9 }
 0x2f9   :  { %v1918_v37 = vand.u32 4294901760, %v1917_v49  ;;  %2473 = vmatpush.msra.mxu0 %v4960_v57  ;;  %v5049_v49 = vld [vmem:[#allocation41_spill] sm:$0xff] }
 0x2fa   :  { %2434 = vmatpush.msrb.mxu3 %v3694_v12  ;;  %2538 = vmatpush.msra.mxu1 %v3655_v62 }
 0x2fb   :  { %1919 = vmatmul.f32.vlgmr.msrb.gmra.mxu2 %v1918_v37  ;;  %2219 = vmatmul.f32.vlgmr.msra.gmra.mxu3 %v1914_v45  ;;  %v5050_v37 = vld [vmem:[#allocation42_spill] sm:$0xff] }
 0x2fc   :  { %2375 = vmatpush.msrb.mxu2 %v4956_v61  ;;  %2436 = vmatpush.msrb.mxu3 %v3715_v46 }
 0x2fd   :  { %2540 = vmatpush.msra.mxu1 %v3676_v48  ;;  %2477 = vmatpush.msra.mxu0 %v4963_v16 }
 0x2fe   :  { %2378 = vmatpush.msrb.mxu2 %v4959_v47  ;;  %2438 = vmatpush.msrb.mxu3 %v3721_v3 }
 0x2ff   :  { %2542 = vmatpush.msra.mxu1 %v3694_v12  ;;  %2481 = vmatpush.msra.mxu0 %v4964_v36 }
 0x300   :  { %2381 = vmatpush.msrb.mxu2 %v4962_v7  ;;  %2440 = vmatpush.msrb.mxu3 %v3741_v15 }
 0x301   :  { %2544 = vmatpush.msra.mxu1 %v3715_v46  ;;  %2485 = vmatpush.msra.mxu0 %v3786_v0 }
 0x302   :  { %2384 = vmatpush.msrb.mxu2 %v3732_v11  ;;  %2442 = vmatpush.msrb.mxu3 %v3769_v50 }
 0x303   :  { %2182 = vmatmul.f32.vlgmr.msra.gmra.mxu2 %v1914_v45  ;;  %2546 = vmatpush.msra.mxu1 %v3721_v3  ;;  %v5034_v45 = vld [vmem:[#allocation24_spill] sm:$0xff] }
 0x304   :  { %2387 = vmatpush.msrb.mxu2 %v3751_v55  ;;  %2444 = vmatpush.msrb.mxu3 %v3789_v13 }
 0x305   :  { %2548 = vmatpush.msra.mxu1 %v3741_v15  ;;  %2489 = vmatpush.msra.mxu0 %v3794_v25 }
 0x306   :  { %2390 = vmatpush.msrb.mxu2 %v3760_v30  ;;  %2446 = vmatpush.msrb.mxu3 %v3806_v32 }
 0x307   :  { %2550 = vmatpush.msra.mxu1 %v3769_v50  ;;  %2493 = vmatpush.msra.mxu0 %v3812_v6 }
 0x308   :  { %2393 = vmatpush.msrb.mxu2 %v3778_v29  ;;  %2448 = vmatpush.msrb.mxu3 %v3824_v40 }
 0x309   :  { %2552 = vmatpush.msra.mxu1 %v3789_v13  ;;  %2497 = vmatpush.msra.mxu0 %v3835_v1 }
 0x30a   :  { %2396 = vmatpush.msrb.mxu2 %v3803_v58  ;;  %2450 = vmatpush.msrb.mxu3 %v3842_v41 }
 0x30b   :  { %2554 = vmatpush.msra.mxu1 %v3806_v32  ;;  %2501 = vmatpush.msra.mxu0 %v3853_v5 }
 0x30c   :  { %2399 = vmatpush.msrb.mxu2 %v3821_v4  ;;  %2452 = vmatpush.msrb.mxu3 %v3860_v42 }
 0x30d   :  { %2556 = vmatpush.msra.mxu1 %v3824_v40  ;;  %2505 = vmatpush.msra.mxu0 %v3872_v21 }
 0x30e   :  { %2402 = vmatpush.msrb.mxu2 %v3839_v23  ;;  %2454 = vmatpush.msrb.mxu3 %v3879_v33 }
 0x30f   :  { %2558 = vmatpush.msra.mxu1 %v3842_v41  ;;  %2509 = vmatpush.msra.mxu0 %v3891_v20 }
 0x310   :  { %2405 = vmatpush.msrb.mxu2 %v3857_v22  ;;  %2456 = vmatpush.msrb.mxu3 %v3898_v34 }
 0x311   :  { %2560 = vmatpush.msra.mxu1 %v3860_v42  ;;  %2513 = vmatpush.msra.mxu0 %v3913_v28 }
 0x312   :  { %2408 = vmatpush.msrb.mxu2 %v3876_v27  ;;  %2458 = vmatpush.msrb.mxu3 %v3950_v17 }
 0x313   :  { %2562 = vmatpush.msra.mxu1 %v3879_v33  ;;  %2517 = vmatpush.msra.mxu0 %v3931_v31 }
 0x314   :  { %2411 = vmatpush.msrb.mxu2 %v4973_v43  ;;  %2626 = vmatpush.msra.mxu3 %v4974_v18 }
 0x315   :  { %2564 = vmatpush.msra.mxu1 %v3898_v34  ;;  %2521 = vmatpush.msra.mxu0 %v4975_v51 }
 0x316   :  { %2414 = vmatpush.msrb.mxu2 %v4976_v26  ;;  %2632 = vmatpush.msra.mxu3 %v5034_v45 }
 0x317   :  { %2566 = vmatpush.msra.mxu1 %v3950_v17  ;;  %2525 = vmatpush.msra.mxu0 %v5035_v54 }
 0x318   :  { %2417 = vmatpush.msrb.mxu2 %v5036_v38  ;;  %2638 = vmatpush.msra.mxu3 %v5037_v53 }
 0x319   :  { %2529 = vmatpush.msra.mxu0 %v5038_v19 }
 0x31a   :  { %2420 = vmatpush.msrb.mxu2 %v5039_v24  ;;  %2644 = vmatpush.msra.mxu3 %v5040_v14 }
 0x31c   :  { %2581 = vmatpush.msra.mxu2 %v3638_v9  ;;  %2650 = vmatpush.msra.mxu3 %v5041_v10 }
 0x31e   :  { %2583 = vmatpush.msra.mxu2 %v3655_v62  ;;  %2656 = vmatpush.msra.mxu3 %v5042_v2 }
 0x320   :  { %2585 = vmatpush.msra.mxu2 %v3676_v48  ;;  %2662 = vmatpush.msra.mxu3 %v5043_v59 }
 0x322   :  { %2587 = vmatpush.msra.mxu2 %v3694_v12  ;;  %2668 = vmatpush.msra.mxu3 %v5044_v44 }
 0x324   :  { %2589 = vmatpush.msra.mxu2 %v3715_v46  ;;  %2674 = vmatpush.msra.mxu3 %v5045_v60  ;;  %v5051_v60 = vld [vmem:[#allocation10_spill] sm:$0xff] }
 0x326   :  { %2591 = vmatpush.msra.mxu2 %v3721_v3  ;;  %2680 = vmatpush.msra.mxu3 %v5046_v8  ;;  %v5052_v8 = vld [vmem:[#allocation11_spill] sm:$0xff] }
 0x328   :  { %2593 = vmatpush.msra.mxu2 %v3741_v15  ;;  %2686 = vmatpush.msra.mxu3 %v5047_v56 }
 0x32a   :  { %2595 = vmatpush.msra.mxu2 %v3769_v50  ;;  %2692 = vmatpush.msra.mxu3 %v5048_v63 }
 0x32c   :  { %2597 = vmatpush.msra.mxu2 %v3789_v13  ;;  %2698 = vmatpush.msra.mxu3 %v5049_v49 }
 0x32e   :  { %2599 = vmatpush.msra.mxu2 %v3806_v32  ;;  %2704 = vmatpush.msra.mxu3 %v5050_v37 }
 0x330   :  { %2601 = vmatpush.msra.mxu2 %v3824_v40  ;;  %2710 = vmatpush.msra.mxu3 %v5051_v60 }
 0x332   :  { %2603 = vmatpush.msra.mxu2 %v3842_v41  ;;  %2716 = vmatpush.msra.mxu3 %v5052_v8 }
 0x334   :  { %2605 = vmatpush.msra.mxu2 %v3860_v42 }
 0x336   :  { %2607 = vmatpush.msra.mxu2 %v3879_v33 }
 0x338   :  { %2609 = vmatpush.msra.mxu2 %v3898_v34 }
 0x33a   :  { %2611 = vmatpush.msra.mxu2 %v3950_v17 }
 0x372   :  { %v2075_v37 = vpop.f32.mrf.mxu0 }
 0x374   :  { %v2114_v59 = vpop.f32.mrf.mxu1 }
 0x376   :  { %v2021_v49 = vpop.f32.mrf.mxu3 }
 0x37e   :  { %v1920_v63 = vpop.f32.mrf.mxu2  ;;  %v2220_v14 = vpop.f32.mrf.mxu3 }
 0x37f   :  { %v2022_v56 = vadd.f32 %v2021_v49, %v1920_v63  ;;  %v5065_v49 = vld [vmem:[#allocation35_spill] sm:$0xff] }
 0x381   :  { %v2076_v44 = vadd.f32 %v2075_v37, %v2022_v56  ;;  %v5064_v56 = vld [vmem:[#allocation33_spill] sm:$0xff] }
 0x382   :  { %v5066_v37 = vld [vmem:[#allocation37_spill] sm:$0xff] }
 0x383   :  { %v2115_v2 = vadd.f32 %v2114_v59, %v2076_v44  ;;  %v5061_v44 = vld [vmem:[#allocation28_spill] sm:$0xff] }
 0x386   :  { %v2183_v60 = vpop.f32.mrf.mxu2 }
 0x387   :  { %v2184_v10 = vadd.f32 %v2183_v60, %v2115_v2  ;;  %v5060_v2 = vld [vmem:[#allocation27_spill] sm:$0xff]  ;;  %v5062_v60 = vld [vmem:[#allocation29_spill] sm:$0xff] }
 0x389   :  { %v2221_v24 = vadd.f32 %v2220_v14, %v2184_v10  ;;  %v5057_v14 = vld [vmem:[#allocation43_spill] sm:$0xff]  ;;  %v5058_v10 = vld [vmem:[#allocation40_spill] sm:$0xff] }
 0x38b   :  { %v2224_v8 = vrot.slane %v2221_v24, 4 }
 0x38d   :  { %v2226_v19 = vadd.f32 %v2224_v8, %v4227_v35  ;;  %v5063_v8 = vld [vmem:[#allocation31_spill] sm:$0xff] }
 0x38f   :  { %3327 = vtanh.f32 %v2226_v19  ;;  %v5056_v19 = vld [vmem:[#allocation25_spill] sm:$0xff] }
 0x395   :  { %v3328_v53 = vpop.eup %3327 }
 0x396   :  { %v4633_v38 = vsel %vm3281_vm3, %v4533_v52, %v3328_v53  ;;  %v2229_v54 = vrot.slane %v3328_v53, 4  ;;  %v5055_v53 = vld [vmem:[#allocation34_spill] sm:$0xff] }
 0x398   :  { %v2263_v45 = vand.u32 4294901760, %v2229_v54 }
 0x39a   :  { %2369 = vmatmul.f32.vlgmr.msrb.gmra.mxu1 %v2263_v45  ;;  %v2264_v63 = vsub.f32 %v2229_v54, %v2263_v45  ;;  %v5054_v54 = vld [vmem:[#allocation38_spill] sm:$0xff] }
 0x39b   :  { %2777 = vmatpush.msrb.mxu1 %v3638_v9 }
 0x39c   :  { %2423 = vmatmul.f32.vlgmr.msrb.gmra.mxu2 %v2264_v63  ;;  %v2265_v59 = vand.u32 4294901760, %v2264_v63 }
 0x39d   :  { %2779 = vmatpush.msrb.mxu1 %v3655_v62  ;;  %2818 = vmatpush.msrb.mxu2 %v4957_v39 }
 0x39e   :  { %2462 = vmatmul.f32.vlgmr.msrb.gmra.mxu3 %v2265_v59  ;;  %v2266_v24 = vsub.f32 %v2264_v63, %v2265_v59  ;;  %v5067_v63 = vld [vmem:[#allocation39_spill] sm:$0xff]  ;;  %v5068_v59 = vld [vmem:[#allocation41_spill] sm:$0xff] }
 0x39f   :  { %2781 = vmatpush.msrb.mxu1 %v3676_v48  ;;  %2885 = vmatpush.msrb.mxu3 %v3638_v9 }
 0x3a0   :  { %v2267_v52 = vand.u32 4294901760, %v2266_v24  ;;  %2822 = vmatpush.msrb.mxu2 %v4960_v57  ;;  %v5069_v24 = vld [vmem:[#allocation42_spill] sm:$0xff] }
 0x3a1   :  { %2783 = vmatpush.msrb.mxu1 %v3694_v12  ;;  %2887 = vmatpush.msrb.mxu3 %v3655_v62 }
 0x3a2   :  { %2268 = vmatmul.f32.vlgmr.msrb.gmra.mxu0 %v2267_v52  ;;  %2568 = vmatmul.f32.vlgmr.msra.gmra.mxu1 %v2263_v45  ;;  %v5070_v52 = vld [vmem:[#allocation10_spill] sm:$0xff] }
 0x3a3   :  { %2724 = vmatpush.msrb.mxu0 %v4956_v61  ;;  %2785 = vmatpush.msrb.mxu1 %v3715_v46 }
 0x3a4   :  { %2889 = vmatpush.msrb.mxu3 %v3676_v48  ;;  %2826 = vmatpush.msrb.mxu2 %v4963_v16 }
 0x3a5   :  { %2727 = vmatpush.msrb.mxu0 %v4959_v47  ;;  %2787 = vmatpush.msrb.mxu1 %v3721_v3 }
 0x3a6   :  { %2891 = vmatpush.msrb.mxu3 %v3694_v12  ;;  %2830 = vmatpush.msrb.mxu2 %v4964_v36 }
 0x3a7   :  { %2730 = vmatpush.msrb.mxu0 %v4962_v7  ;;  %2789 = vmatpush.msrb.mxu1 %v3741_v15 }
 0x3a8   :  { %2893 = vmatpush.msrb.mxu3 %v3715_v46  ;;  %2834 = vmatpush.msrb.mxu2 %v3786_v0 }
 0x3a9   :  { %2733 = vmatpush.msrb.mxu0 %v3732_v11  ;;  %2791 = vmatpush.msrb.mxu1 %v3769_v50 }
 0x3aa   :  { %2531 = vmatmul.f32.vlgmr.msra.gmra.mxu0 %v2263_v45  ;;  %2895 = vmatpush.msrb.mxu3 %v3721_v3  ;;  %v5053_v45 = vld [vmem:[#allocation24_spill] sm:$0xff] }
 0x3ab   :  { %2736 = vmatpush.msrb.mxu0 %v3751_v55  ;;  %2793 = vmatpush.msrb.mxu1 %v3789_v13 }
 0x3ac   :  { %2897 = vmatpush.msrb.mxu3 %v3741_v15  ;;  %2838 = vmatpush.msrb.mxu2 %v3794_v25 }
 0x3ad   :  { %2739 = vmatpush.msrb.mxu0 %v3760_v30  ;;  %2795 = vmatpush.msrb.mxu1 %v3806_v32 }
 0x3ae   :  { %2899 = vmatpush.msrb.mxu3 %v3769_v50  ;;  %2842 = vmatpush.msrb.mxu2 %v3812_v6 }
 0x3af   :  { %2742 = vmatpush.msrb.mxu0 %v3778_v29  ;;  %2797 = vmatpush.msrb.mxu1 %v3824_v40 }
 0x3b0   :  { %2901 = vmatpush.msrb.mxu3 %v3789_v13  ;;  %2846 = vmatpush.msrb.mxu2 %v3835_v1 }
 0x3b1   :  { %2745 = vmatpush.msrb.mxu0 %v3803_v58  ;;  %2799 = vmatpush.msrb.mxu1 %v3842_v41 }
 0x3b2   :  { %2903 = vmatpush.msrb.mxu3 %v3806_v32  ;;  %2850 = vmatpush.msrb.mxu2 %v3853_v5 }
 0x3b3   :  { %2748 = vmatpush.msrb.mxu0 %v3821_v4  ;;  %2801 = vmatpush.msrb.mxu1 %v3860_v42 }
 0x3b4   :  { %2905 = vmatpush.msrb.mxu3 %v3824_v40  ;;  %2854 = vmatpush.msrb.mxu2 %v3872_v21 }
 0x3b5   :  { %2751 = vmatpush.msrb.mxu0 %v3839_v23  ;;  %2803 = vmatpush.msrb.mxu1 %v3879_v33 }
 0x3b6   :  { %2907 = vmatpush.msrb.mxu3 %v3842_v41  ;;  %2858 = vmatpush.msrb.mxu2 %v3891_v20 }
 0x3b7   :  { %2754 = vmatpush.msrb.mxu0 %v3857_v22  ;;  %2805 = vmatpush.msrb.mxu1 %v3898_v34 }
 0x3b8   :  { %2909 = vmatpush.msrb.mxu3 %v3860_v42  ;;  %2862 = vmatpush.msrb.mxu2 %v3913_v28 }
 0x3b9   :  { %2757 = vmatpush.msrb.mxu0 %v3876_v27  ;;  %2807 = vmatpush.msrb.mxu1 %v3950_v17 }
 0x3ba   :  { %2911 = vmatpush.msrb.mxu3 %v3879_v33  ;;  %2866 = vmatpush.msrb.mxu2 %v3931_v31 }
 0x3bb   :  { %2760 = vmatpush.msrb.mxu0 %v4973_v43  ;;  %2975 = vmatpush.msra.mxu1 %v4974_v18  ;;  %v5059_v18 = vld [vmem:[#allocation26_spill] sm:$0xff] }
 0x3bc   :  { %2913 = vmatpush.msrb.mxu3 %v3898_v34  ;;  %2870 = vmatpush.msrb.mxu2 %v4975_v51 }
 0x3bd   :  { %2763 = vmatpush.msrb.mxu0 %v4976_v26  ;;  %2981 = vmatpush.msra.mxu1 %v5053_v45  ;;  %v5071_v45 = vld [vmem:[#allocation11_spill] sm:$0xff] }
 0x3be   :  { %2915 = vmatpush.msrb.mxu3 %v3950_v17  ;;  %2874 = vmatpush.msrb.mxu2 %v5054_v54 }
 0x3bf   :  { %2766 = vmatpush.msrb.mxu0 %v5055_v53  ;;  %2987 = vmatpush.msra.mxu1 %v5056_v19 }
 0x3c0   :  { %2878 = vmatpush.msrb.mxu2 %v5057_v14 }
 0x3c1   :  { %2769 = vmatpush.msrb.mxu0 %v5058_v10  ;;  %2993 = vmatpush.msra.mxu1 %v5059_v18 }
 0x3c3   :  { %2930 = vmatpush.msra.mxu0 %v3638_v9  ;;  %2999 = vmatpush.msra.mxu1 %v5060_v2 }
 0x3c5   :  { %2932 = vmatpush.msra.mxu0 %v3655_v62  ;;  %3005 = vmatpush.msra.mxu1 %v5061_v44 }
 0x3c7   :  { %2934 = vmatpush.msra.mxu0 %v3676_v48  ;;  %3011 = vmatpush.msra.mxu1 %v5062_v60 }
 0x3c9   :  { %2936 = vmatpush.msra.mxu0 %v3694_v12  ;;  %3017 = vmatpush.msra.mxu1 %v5063_v8 }
 0x3cb   :  { %2938 = vmatpush.msra.mxu0 %v3715_v46  ;;  %3023 = vmatpush.msra.mxu1 %v5064_v56 }
 0x3cd   :  { %2940 = vmatpush.msra.mxu0 %v3721_v3  ;;  %3029 = vmatpush.msra.mxu1 %v5065_v49 }
 0x3cf   :  { %2942 = vmatpush.msra.mxu0 %v3741_v15  ;;  %3035 = vmatpush.msra.mxu1 %v5066_v37 }
 0x3d1   :  { %2944 = vmatpush.msra.mxu0 %v3769_v50  ;;  %3041 = vmatpush.msra.mxu1 %v5067_v63 }
 0x3d3   :  { %2946 = vmatpush.msra.mxu0 %v3789_v13  ;;  %3047 = vmatpush.msra.mxu1 %v5068_v59 }
 0x3d5   :  { %2948 = vmatpush.msra.mxu0 %v3806_v32  ;;  %3053 = vmatpush.msra.mxu1 %v5069_v24 }
 0x3d7   :  { %2950 = vmatpush.msra.mxu0 %v3824_v40  ;;  %3059 = vmatpush.msra.mxu1 %v5070_v52 }
 0x3d9   :  { %2952 = vmatpush.msra.mxu0 %v3842_v41  ;;  %3065 = vmatpush.msra.mxu1 %v5071_v45 }
 0x3db   :  { %2954 = vmatpush.msra.mxu0 %v3860_v42 }
 0x3dd   :  { %2956 = vmatpush.msra.mxu0 %v3879_v33 }
 0x3df   :  { %2958 = vmatpush.msra.mxu0 %v3898_v34 }
 0x3e1   :  { %2960 = vmatpush.msra.mxu0 %v3950_v17 }
 0x417   :  { %v2370_v19 = vpop.f32.mrf.mxu1 }
 0x41f   :  { %v2269_v18 = vpop.f32.mrf.mxu0  ;;  %v2424_v44 = vpop.f32.mrf.mxu2 }
 0x420   :  { %v2371_v2 = vadd.f32 %v2370_v19, %v2269_v18  ;;  %v2569_v63 = vpop.f32.mrf.mxu1 }
 0x421   :  { %v2463_v8 = vpop.f32.mrf.mxu3 }
 0x422   :  { %v2425_v60 = vadd.f32 %v2424_v44, %v2371_v2 }
 0x424   :  { %v2464_v56 = vadd.f32 %v2463_v8, %v2425_v60 }
 0x427   :  { %v2532_v49 = vpop.f32.mrf.mxu0 }
 0x428   :  { %v2533_v37 = vadd.f32 %v2532_v49, %v2464_v56 }
 0x42a   :  { %v2570_v59 = vadd.f32 %v2569_v63, %v2533_v37 }
 0x42c   :  { %v2573_v24 = vrot.slane %v2570_v59, 3 }
 0x42e   :  { %v2575_v52 = vadd.f32 %v2573_v24, %v4227_v35 }
 0x430   :  { %3329 = vtanh.f32 %v2575_v52 }
 0x436   :  { %v3330_v45 = vpop.eup %3329 }
 0x437   :  { %v4733_v10 = vsel %vm3283_vm4, %v4633_v38, %v3330_v45  ;;  %v2578_v14 = vrot.slane %v3330_v45, 5 }
 0x439   :  { %v2612_v53 = vand.u32 4294901760, %v2578_v14 }
 0x43b   :  { %2718 = vmatmul.f32.vlgmr.msra.gmra.mxu3 %v2612_v53  ;;  %v2613_v19 = vsub.f32 %v2578_v14, %v2612_v53 }
 0x43c   :  { %3126 = vmatpush.msra.mxu3 %v3638_v9 }
 0x43d   :  { %2772 = vmatmul.f32.vlgmr.msrb.gmra.mxu0 %v2613_v19  ;;  %v2614_v18 = vand.u32 4294901760, %v2613_v19 }
 0x43e   :  { %3128 = vmatpush.msra.mxu3 %v3655_v62  ;;  %3167 = vmatpush.msrb.mxu0 %v4957_v39 }
 0x43f   :  { %2811 = vmatmul.f32.vlgmr.msrb.gmra.mxu1 %v2614_v18  ;;  %v2615_v2 = vsub.f32 %v2613_v19, %v2614_v18 }
 0x440   :  { %3130 = vmatpush.msra.mxu3 %v3676_v48  ;;  %3234 = vmatpush.msrb.mxu1 %v3638_v9 }
 0x441   :  { %v2616_v38 = vand.u32 4294901760, %v2615_v2  ;;  %3171 = vmatpush.msrb.mxu0 %v4960_v57 }
 0x442   :  { %3132 = vmatpush.msra.mxu3 %v3694_v12  ;;  %3236 = vmatpush.msrb.mxu1 %v3655_v62 }
 0x443   :  { %2617 = vmatmul.f32.vlgmr.msra.gmra.mxu2 %v2616_v38  ;;  %2917 = vmatmul.f32.vlgmr.msrb.gmra.mxu3 %v2612_v53 }
 0x444   :  { %3073 = vmatpush.msra.mxu2 %v4956_v61  ;;  %3134 = vmatpush.msra.mxu3 %v3715_v46 }
 0x445   :  { %3238 = vmatpush.msrb.mxu1 %v3676_v48  ;;  %3175 = vmatpush.msrb.mxu0 %v4963_v16  ;;  %v5073_v48 = vld [vmem:[#allocation43_spill] sm:$0xff] }
 0x446   :  { %3076 = vmatpush.msra.mxu2 %v4959_v47  ;;  %3136 = vmatpush.msra.mxu3 %v3721_v3 }
 0x447   :  { %3240 = vmatpush.msrb.mxu1 %v3694_v12  ;;  %3179 = vmatpush.msrb.mxu0 %v4964_v36 }
 0x448   :  { %3079 = vmatpush.msra.mxu2 %v4962_v7  ;;  %3138 = vmatpush.msra.mxu3 %v3741_v15 }
 0x449   :  { %3242 = vmatpush.msrb.mxu1 %v3715_v46  ;;  %3183 = vmatpush.msrb.mxu0 %v3786_v0  ;;  %v5072_v46 = vld [vmem:[#allocation34_spill] sm:$0xff] }
 0x44a   :  { %3082 = vmatpush.msra.mxu2 %v3732_v11  ;;  %3140 = vmatpush.msra.mxu3 %v3769_v50 }
 0x44b   :  { %2880 = vmatmul.f32.vlgmr.msrb.gmra.mxu2 %v2612_v53  ;;  %3244 = vmatpush.msrb.mxu1 %v3721_v3 }
 0x44c   :  { %3085 = vmatpush.msra.mxu2 %v3751_v55  ;;  %3142 = vmatpush.msra.mxu3 %v3789_v13 }
 0x44d   :  { %3246 = vmatpush.msrb.mxu1 %v3741_v15  ;;  %3187 = vmatpush.msrb.mxu0 %v3794_v25 }
 0x44e   :  { %3088 = vmatpush.msra.mxu2 %v3760_v30  ;;  %3144 = vmatpush.msra.mxu3 %v3806_v32 }
 0x44f   :  { %3248 = vmatpush.msrb.mxu1 %v3769_v50  ;;  %3191 = vmatpush.msrb.mxu0 %v3812_v6  ;;  %v5074_v50 = vld [vmem:[#allocation40_spill] sm:$0xff] }
 0x450   :  { %3091 = vmatpush.msra.mxu2 %v3778_v29  ;;  %3146 = vmatpush.msra.mxu3 %v3824_v40 }
 0x451   :  { %3250 = vmatpush.msrb.mxu1 %v3789_v13  ;;  %3195 = vmatpush.msrb.mxu0 %v3835_v1 }
 0x452   :  { %3094 = vmatpush.msra.mxu2 %v3803_v58  ;;  %3148 = vmatpush.msra.mxu3 %v3842_v41 }
 0x453   :  { %3252 = vmatpush.msrb.mxu1 %v3806_v32  ;;  %3199 = vmatpush.msrb.mxu0 %v3853_v5 }
 0x454   :  { %3097 = vmatpush.msra.mxu2 %v3821_v4  ;;  %3150 = vmatpush.msra.mxu3 %v3860_v42 }
 0x455   :  { %3254 = vmatpush.msrb.mxu1 %v3824_v40  ;;  %3203 = vmatpush.msrb.mxu0 %v3872_v21 }
 0x456   :  { %3100 = vmatpush.msra.mxu2 %v3839_v23  ;;  %3152 = vmatpush.msra.mxu3 %v3879_v33 }
 0x457   :  { %3256 = vmatpush.msrb.mxu1 %v3842_v41  ;;  %3207 = vmatpush.msrb.mxu0 %v3891_v20 }
 0x458   :  { %3103 = vmatpush.msra.mxu2 %v3857_v22  ;;  %3154 = vmatpush.msra.mxu3 %v3898_v34 }
 0x459   :  { %3258 = vmatpush.msrb.mxu1 %v3860_v42  ;;  %3211 = vmatpush.msrb.mxu0 %v3913_v28 }
 0x45a   :  { %3106 = vmatpush.msra.mxu2 %v3876_v27  ;;  %3156 = vmatpush.msra.mxu3 %v3950_v17 }
 0x45b   :  { %3260 = vmatpush.msrb.mxu1 %v3879_v33  ;;  %3215 = vmatpush.msrb.mxu0 %v3931_v31 }
 0x45c   :  { %3109 = vmatpush.msra.mxu2 %v4973_v43 }
 0x45d   :  { %3262 = vmatpush.msrb.mxu1 %v3898_v34  ;;  %3219 = vmatpush.msrb.mxu0 %v4975_v51 }
 0x45e   :  { %3112 = vmatpush.msra.mxu2 %v4976_v26 }
 0x45f   :  { %3264 = vmatpush.msrb.mxu1 %v3950_v17  ;;  %3223 = vmatpush.msrb.mxu0 %v5054_v54 }
 0x460   :  { %3115 = vmatpush.msra.mxu2 %v5072_v46 }
 0x461   :  { %3227 = vmatpush.msrb.mxu0 %v5073_v48 }
 0x462   :  { %3118 = vmatpush.msra.mxu2 %v5074_v50 }
 0x4ba   :  { %v2773_v15 = vpop.f32.mrf.mxu0 }
 0x4bc   :  { %v2812_v55 = vpop.f32.mrf.mxu1 }
 0x4be   :  { %v2719_v58 = vpop.f32.mrf.mxu3 }
 0x4c6   :  { %v2618_v62 = vpop.f32.mrf.mxu2  ;;  %v2918_v12 = vpop.f32.mrf.mxu3 }
 0x4c7   :  { %v2720_v11 = vadd.f32 %v2719_v58, %v2618_v62 }
 0x4c9   :  { %v2774_v6 = vadd.f32 %v2773_v15, %v2720_v11 }
 0x4cb   :  { %v2813_v9 = vadd.f32 %v2812_v55, %v2774_v6 }
 0x4ce   :  { %v2881_v13 = vpop.f32.mrf.mxu2 }
 0x4cf   :  { %v2882_v4 = vadd.f32 %v2881_v13, %v2813_v9 }
 0x4d1   :  { %v2919_v32 = vadd.f32 %v2918_v12, %v2882_v4 }
 0x4d3   :  { %v2922_v3 = vrot.slane %v2919_v32, 2 }
 0x4d5   :  { %v2924_v30 = vadd.f32 %v2922_v3, %v4227_v35 }
 0x4d7   :  { %3331 = vtanh.f32 %v2924_v30 }
 0x4dd   :  { %v3332_v29 = vpop.eup %3331 }
 0x4de   :  { %v3286_v0 = vsel %vm3285_vm5, %v4733_v10, %v3332_v29  ;;  %v2927_v25 = vrot.slane %v3332_v29, 6 }
 0x4e0   :  { %v2961_v5 = vand.u32 4294901760, %v2927_v25 }
 0x4e2   :  { %3067 = vmatmul.f32.vlgmr.msra.gmra.mxu1 %v2961_v5  ;;  %v2962_v27 = vsub.f32 %v2927_v25, %v2961_v5 }
 0x4e4   :  { %3121 = vmatmul.f32.vlgmr.msra.gmra.mxu2 %v2962_v27  ;;  %v2963_v40 = vand.u32 4294901760, %v2962_v27 }
 0x4e6   :  { %3160 = vmatmul.f32.vlgmr.msra.gmra.mxu3 %v2963_v40  ;;  %v2964_v1 = vsub.f32 %v2962_v27, %v2963_v40 }
 0x4e8   :  { %v2965_v23 = vand.u32 4294901760, %v2964_v1 }
 0x4ea   :  { %2966 = vmatmul.f32.vlgmr.msra.gmra.mxu0 %v2965_v23  ;;  %3266 = vmatmul.f32.vlgmr.msrb.gmra.mxu1 %v2961_v5 }
 0x4f2   :  { %3229 = vmatmul.f32.vlgmr.msrb.gmra.mxu0 %v2961_v5 }
 0x55f   :  { %v3068_v41 = vpop.f32.mrf.mxu1 }
 0x567   :  { %v2967_v28 = vpop.f32.mrf.mxu0  ;;  %v3122_v42 = vpop.f32.mrf.mxu2 }
 0x568   :  { %v3069_v22 = vadd.f32 %v3068_v41, %v2967_v28  ;;  %v3267_v17 = vpop.f32.mrf.mxu1 }
 0x569   :  { %v3161_v21 = vpop.f32.mrf.mxu3 }
 0x56a   :  { %v3123_v31 = vadd.f32 %v3122_v42, %v3069_v22 }
 0x56c   :  { %v3162_v33 = vadd.f32 %v3161_v21, %v3123_v31 }
 0x56f   :  { %v3230_v20 = vpop.f32.mrf.mxu0 }
 0x570   :  { %v3231_v34 = vadd.f32 %v3230_v20, %v3162_v33 }
 0x572   :  { %v3268_v61 = vadd.f32 %v3267_v17, %v3231_v34 }
 0x574   :  { %v3271_v39 = vrot.slane %v3268_v61, 1 }
 0x576   :  { %v3273_v47 = vadd.f32 %v3271_v39, %v4227_v35 }
 0x578   :  { %3333 = vtanh.f32 %v3273_v47 }
 0x57e   :  { %v3334_v57 = vpop.eup %3333 }
 0x57f   :  { %v3288_v7 = vsel %vm3287_vm6, %v3286_v0, %v3334_v57  ;;  %3290 = vst [vmem:[#allocation4 - $0x7] sm:$0x80] %v3334_v57 }
 0x580   :  { %3289 = vst [vmem:[%s4808_s3] sm:$0xff] %v3288_v7 }
 0x581   :  { %3295 = vsyncmov [#allocation5] }
 0x584   :  { %s3296_s23 = vpop.sfrf %3295 }
 0x585   :  { %p3316_p0 = scmp.ne.s32.totalorder %s3296_s23, 0 }
 0x587   :  { %3300 = shalt.err (%p3316_p0)  }
 0x588   :  { %3302 = vsyncmov [#allocation5 + $0x1] }
 0x58b   :  { %s3303_s24 = vpop.sfrf %3302 }
 0x58c   :  { %p3317_p1 = scmp.ne.s32.totalorder %s3303_s24, 0 }
 0x58e   :  { %3307 = shalt.err (%p3317_p1)  }

</bundles_post_ra>
